<compile_context>
chip_gen: v7x
topology: tpu7x:2x2x1
jax: 0.10.0
libtpu: 0.0.40
codegen_flags: <defaults>
</compile_context>

<pallas_src>
import jax
import jax.numpy as jnp
from jax import lax
from jax.experimental import pallas as pl
from jax.experimental.pallas import tpu as pltpu


def _round_up(x, m):
    return (x + m - 1) // m * m


def _cdiv(a, b):
    return (a + b - 1) // b


def _tpu_kind():
    try:
        return jax.devices()[0].device_kind.lower()
    except Exception:
        return ""


def _cores_per_chip(kind):
    # Chips where one Pallas program sees 2 TensorCores (megacore / v7x): the
    # "parallel" batch grid axis is sharded across them.  Single-TC chips
    # (v5e / v6e) must keep the whole batch in one block — grid blocks run
    # sequentially there.
    if "v7" in kind or "7x" in kind:
        return 2
    if "v4" in kind or "v5p" in kind:
        return 2
    return 1


def _vmem_budget(kind):
    """(vmem_limit_bytes, working-set target) from physical VMEM."""
    phys = 0
    try:
        info = pltpu.get_tpu_info()
        phys = int(getattr(info, "vmem_capacity_bytes", 0) or 0)
    except Exception:
        phys = 0
    if phys <= 0:
        is_v7 = ("v7" in kind) or ("7x" in kind)
        phys = (64 if is_v7 else 128) * 1024 * 1024
    limit = min(phys - (16 << 20), int(0.80 * phys))
    limit = max(limit, 32 << 20)
    target = int(0.75 * limit)
    return limit, target


def gru_kernel(lens_ref, gx_ref, whh_ref, bhhn_ref, out_ref, hid_ref, h_scr):
    """One grid step == one (batch block, time chunk); data is TIME-MAJOR.

    lens_ref : (BB, 128) int32     valid sequence length per batch row
    gx_ref   : (TT, BB, 3Hp)       precomputed x @ W_ih^T + b_ih (+ b_hh r,z)
    whh_ref  : (Hp, 3Hp)           W_hh^T, gate-padded, gate order [r | z | n]
    bhhn_ref : (1, Hp)  f32        b_hh for the n gate (stays inside r*(...))
    out_ref  : (TT, BB, Hp)        per-chunk output (zero past each row length)
    hid_ref  : (BB, Hp) f32        final hidden state (written at last chunk)
    h_scr    : (BB, Hp) f32        hidden-state accumulator across time chunks
    """
    tc = pl.program_id(1)
    n_tc = pl.num_programs(1)
    TT = gx_ref.shape[0]
    Hp = h_scr.shape[1]

    @pl.when(tc == 0)
    def _():
        h_scr[...] = jnp.zeros_like(h_scr)

    lens = lens_ref[:, 0:1]          # (BB, 1) int32
    b_hh_n = bhhn_ref[...]           # (1, Hp) f32 (single vreg row, cheap)
    t_base = tc * TT

    def step(i, carry):
        h_prev = h_scr[...]                                       # (BB, Hp) f32
        # Time is the leading (untiled) axis -> this is a full-tile (BB, 3Hp) load.
        gx_t = gx_ref[pl.ds(i, 1), :, :][0].astype(jnp.float32)
        # Feed the MXU straight from the resident weight buffer (no hoisted
        # VMEM copy of W_hh^T per chunk).
        gh = jnp.dot(h_prev.astype(whh_ref.dtype), whh_ref[...],
                     preferred_element_type=jnp.float32)           # (BB, 3Hp)

        r = jax.nn.sigmoid(gx_t[:, :Hp] + gh[:, :Hp])
        z = jax.nn.sigmoid(gx_t[:, Hp:2 * Hp] + gh[:, Hp:2 * Hp])
        n = jnp.tanh(gx_t[:, 2 * Hp:] + r * (gh[:, 2 * Hp:] + b_hh_n))
        h_new = (1.0 - z) * n + z * h_prev                         # (BB, Hp)

        mask = (t_base + i) < lens                                 # (BB, 1) bool
        h_scr[...] = jnp.where(mask, h_new, h_prev)
        # Full (BB, Hp) slab store — unmasked vst, no per-sublane partial writes.
        out_ref[pl.ds(i, 1), :, :] = (
            jnp.where(mask, h_new, 0.0)[None].astype(out_ref.dtype))
        return carry

    # Always partially unroll (amortizes loop/scalar overhead, lets the LLO
    # scheduler hide the next step's load / previous step's store under the
    # recurrent matmul).  TT is always a multiple of 8.
    lax.fori_loop(0, TT, step, 0, unroll=8)

    @pl.when(tc == n_tc - 1)
    def _():
        hid_ref[...] = h_scr[...].astype(hid_ref.dtype)


def encoder_forward(tokens, lengths, params, *, time_chunk=None,
                    batch_block=None, compute_dtype=jnp.bfloat16,
                    out_dtype=None):
    """tokens: (B, T) int32, lengths: (B,) int32.  Returns (output, hidden).

    output: (B, T, H) in `out_dtype` (default = compute_dtype), zero past lengths.
    hidden: (1, B, H) f32   (layers * directions = 1).
    """
    emb_table = params["embedding"]                   # (V, E)
    w_ih, w_hh = params["w_ih"], params["w_hh"]       # (3H, E), (3H, H)
    b_ih, b_hh = params["b_ih"], params["b_hh"]       # (3H,), (3H,)

    if out_dtype is None:
        out_dtype = compute_dtype

    B, T = tokens.shape
    H = w_hh.shape[1]
    E = emb_table.shape[1]
    f32 = jnp.float32

    kind = _tpu_kind()

    # ---- padded / lane-dense sizes -------------------------------------
    Hp = _round_up(H, 128)                            # lane-dense gate width
    G = 3 * Hp
    BP = _round_up(B, 8)                              # sublane-aligned batch

    # Batch block: whole batch on single-TC chips; split across cores on
    # multi-TC chips so dimension_semantics[0]="parallel" actually engages both.
    cores = _cores_per_chip(kind)
    if batch_block is None:
        if cores > 1 and BP >= 8 * cores:
            BB = _round_up(_cdiv(BP, cores), 8)
        else:
            BB = BP
    else:
        BB = min(_round_up(max(batch_block, 1), 8), BP)
    if BP % BB != 0:
        BB = BP

    # ---- time-chunk sizing from the VMEM working set --------------------
    vmem_limit, vmem_target = _vmem_budget(kind)
    cbytes = jnp.dtype(compute_dtype).itemsize
    obytes = jnp.dtype(out_dtype).itemsize
    fixed = 2 * Hp * G * cbytes          # W_hh^T (double-buffered by default)
    fixed += 2 * 8 * Hp * 4              # b_hh_n (sublane-padded)
    fixed += 2 * BB * 128 * 4            # lengths block
    fixed += 2 * BB * Hp * 4             # hidden-state output block
    fixed += BB * Hp * 4                 # h_scr scratch
    per_step = 2 * BB * (G * cbytes + Hp * obytes)     # gx + out (double-buffered)
    t_full = _round_up(T, 8)
    TT = max(8, min(t_full, ((vmem_target - fixed) // per_step) // 8 * 8))
    if time_chunk is not None:
        TT = max(8, min(TT, _round_up(time_chunk, 8)))
    n_chunks = _cdiv(t_full, TT)
    TT = _round_up(_cdiv(t_full, n_chunks), 8)         # balance chunk sizes
    Tp = n_chunks * TT

    # ---- gate-padded parameters (pad the small weights, not the big gx) ----
    w_ih32 = w_ih.astype(f32)
    b_ih32 = b_ih.astype(f32)
    b_hh32 = b_hh.astype(f32)
    whh_t = w_hh.astype(f32).T                         # (H, 3H)
    # Fold b_ih (all gates) + b_hh (r,z gates) into the precomputed gx;
    # b_hh_n must stay inside r*(W_hn h + b_hn) per PyTorch GRU semantics.
    bias_fold = b_ih32 + jnp.concatenate([b_hh32[:2 * H], jnp.zeros((H,), f32)])

    w_ih_p = jnp.zeros((G, E), f32)
    bias_p = jnp.zeros((G,), f32)
    whh_p = jnp.zeros((Hp, G), f32)
    for g in range(3):
        w_ih_p = w_ih_p.at[g * Hp:g * Hp + H].set(w_ih32[g * H:(g + 1) * H])
        bias_p = bias_p.at[g * Hp:g * Hp + H].set(bias_fold[g * H:(g + 1) * H])
        whh_p = whh_p.at[:H, g * Hp:g * Hp + H].set(whh_t[:, g * H:(g + 1) * H])
    bhhn_p = jnp.zeros((1, Hp), f32).at[0, :H].set(b_hh32[2 * H:])
    whh_c = whh_p.astype(compute_dtype)

    # ---- hoisted input projection: one batched MXU matmul, TIME-MAJOR -----
    xt = jnp.take(emb_table, tokens.T.astype(jnp.int32), axis=0)    # (T, B, E)
    if jnp.dtype(compute_dtype) == jnp.dtype(jnp.float32):
        gx = jnp.einsum("tbe,ge->tbg", xt.astype(f32), w_ih_p,
                        precision=lax.Precision.HIGHEST)            # validation
    else:
        gx = jnp.einsum("tbe,ge->tbg", xt.astype(compute_dtype),
                        w_ih_p.astype(compute_dtype),
                        preferred_element_type=f32)                 # 1-pass bf16
    gx = gx + bias_p                                                # (T, B, 3Hp)
    gx_p = jnp.pad(gx, ((0, Tp - T), (0, BP - B), (0, 0))).astype(compute_dtype)

    lens_p = jnp.zeros((BP,), jnp.int32).at[:B].set(lengths.astype(jnp.int32))
    lens_2d = jnp.tile(lens_p[:, None], (1, 128))                   # (BP, 128)

    grid = (BP // BB, Tp // TT)

    out_p, hid_p = pl.pallas_call(
        gru_kernel,
        out_shape=(
            jax.ShapeDtypeStruct((Tp, BP, Hp), out_dtype),
            jax.ShapeDtypeStruct((BP, Hp), jnp.float32),
        ),
        grid_spec=pltpu.PrefetchScalarGridSpec(
            num_scalar_prefetch=0,
            grid=grid,
            in_specs=[
                pl.BlockSpec((BB, 128), lambda b, t: (b, 0)),        # lengths
                pl.BlockSpec((TT, BB, G), lambda b, t: (t, b, 0)),   # gx chunk
                pl.BlockSpec((Hp, G), lambda b, t: (0, 0)),          # W_hh^T
                pl.BlockSpec((1, Hp), lambda b, t: (0, 0)),          # b_hh_n
            ],
            out_specs=[
                pl.BlockSpec((TT, BB, Hp), lambda b, t: (t, b, 0)),  # output
                pl.BlockSpec((BB, Hp), lambda b, t: (b, 0)),         # hidden
            ],
            scratch_shapes=[pltpu.VMEM((BB, Hp), jnp.float32)],
        ),
        compiler_params=pltpu.CompilerParams(
            dimension_semantics=("parallel", "arbitrary"),
            vmem_limit_bytes=int(vmem_limit)),
    )(lens_2d, gx_p, whh_c, bhhn_p)

    # NOTE: PyTorch's pad_packed_sequence pads to max(lengths); here the output
    # is padded to T (slice to max(lengths) outside if strictly required).
    output = jnp.transpose(out_p[:T, :B, :H], (1, 0, 2))             # (B, T, H)
    hidden = hid_p[:B, :H][None]                                     # (1, B, H)
    return output, hidden


def encoder_forward_ref(tokens, lengths, params):
    """Pure-JAX f32 reference (masked GRU == packed-sequence GRU)."""
    emb = jnp.take(params["embedding"], tokens, axis=0)
    x = jnp.transpose(emb, (1, 0, 2)).astype(jnp.float32)   # (T, B, E)
    T, B, _ = x.shape
    H = params["w_hh"].shape[1]
    w_ih, w_hh = params["w_ih"], params["w_hh"]
    b_ih, b_hh = params["b_ih"], params["b_hh"]

    def step(h, inp):
        x_t, t = inp
        gx = jnp.dot(x_t, w_ih.T, precision=lax.Precision.HIGHEST) + b_ih
        gh = jnp.dot(h, w_hh.T, precision=lax.Precision.HIGHEST) + b_hh
        r = jax.nn.sigmoid(gx[:, :H] + gh[:, :H])
        z = jax.nn.sigmoid(gx[:, H:2 * H] + gh[:, H:2 * H])
        n = jnp.tanh(gx[:, 2 * H:] + r * gh[:, 2 * H:])
        h_new = (1.0 - z) * n + z * h
        mask = (t < lengths)[:, None]
        return jnp.where(mask, h_new, h), jnp.where(mask, h_new, 0.0)

    h0 = jnp.zeros((B, H), jnp.float32)
    h_last, outs = lax.scan(step, h0, (x, jnp.arange(T)))
    return jnp.transpose(outs, (1, 0, 2)), h_last[None]


def init_params(key, vocab, embed_dim, hidden_dim):
    k1, k2, k3, k4, k5 = jax.random.split(key, 5)
    bound = 1.0 / jnp.sqrt(hidden_dim)
    return {
        "embedding": jax.random.normal(k1, (vocab, embed_dim), jnp.float32),
        "w_ih": jax.random.uniform(k2, (3 * hidden_dim, embed_dim),
                                   jnp.float32, -bound, bound),
        "w_hh": jax.random.uniform(k3, (3 * hidden_dim, hidden_dim),
                                   jnp.float32, -bound, bound),
        "b_ih": jax.random.uniform(k4, (3 * hidden_dim,), jnp.float32, -bound, bound),
        "b_hh": jax.random.uniform(k5, (3 * hidden_dim,), jnp.float32, -bound, bound),
    }


if __name__ == "__main__":
    # ---- config 1: module-default small shapes --------------------------
    VOCAB, EMBED, HIDDEN = 16, 32, 32
    B, T = 2, 8

    key = jax.random.PRNGKey(0)
    kp, kt = jax.random.split(key)
    params = init_params(kp, VOCAB, EMBED, HIDDEN)

    tokens = jax.random.randint(kt, (B, T), 0, VOCAB, dtype=jnp.int32)
    lengths = jnp.array([T, 5], dtype=jnp.int32)

    ref_out, ref_hid = encoder_forward_ref(tokens, lengths, params)

    # Tight check: f32 compute path must match the pure-JAX reference closely.
    out_f32, hid_f32 = encoder_forward(tokens, lengths, params,
                                       compute_dtype=jnp.float32)
    out_f32, hid_f32 = jax.block_until_ready((out_f32, hid_f32))
    assert out_f32.shape == (B, T, HIDDEN)
    assert hid_f32.shape == (1, B, HIDDEN)
    assert jnp.allclose(out_f32, ref_out, atol=1e-5, rtol=1e-5)
    assert jnp.allclose(hid_f32, ref_hid, atol=1e-5, rtol=1e-5)

    # Default perf path (bf16 MXU operands + bf16 output, f32 accumulation).
    output, hidden = encoder_forward(tokens, lengths, params)
    output, hidden = jax.block_until_ready((output, hidden))
    assert output.shape == (B, T, HIDDEN)
    assert hidden.shape == (1, B, HIDDEN)
    assert jnp.allclose(output.astype(jnp.float32), ref_out, atol=5e-2)
    assert jnp.allclose(hidden, ref_hid, atol=5e-2)

    # ---- config 2: multi time-chunk + padded batch (exercises the hidden
    # carry across chunks and the masking of padded rows) -----------------
    B2, T2, H2, E2, V2 = 5, 40, 64, 48, 32
    params2 = init_params(jax.random.PRNGKey(1), V2, E2, H2)
    tokens2 = jax.random.randint(jax.random.PRNGKey(2), (B2, T2), 0, V2,
                                 dtype=jnp.int32)
    lengths2 = jnp.array([T2, 31, 17, 40, 1], dtype=jnp.int32)
    ref_out2, ref_hid2 = encoder_forward_ref(tokens2, lengths2, params2)
    out2, hid2 = encoder_forward(tokens2, lengths2, params2,
                                 compute_dtype=jnp.float32, time_chunk=16)
    out2, hid2 = jax.block_until_ready((out2, hid2))
    assert out2.shape == (B2, T2, H2)
    assert hid2.shape == (1, B2, H2)
    assert jnp.allclose(out2, ref_out2, atol=1e-4, rtol=1e-4)
    assert jnp.allclose(hid2, ref_hid2, atol=1e-4, rtol=1e-4)

    print("KERNEL_OK")
</pallas_src>

<mosaic_0001>
module attributes {stable_mosaic.version = 11 : i64} {
  func.func @gru_kernel(%arg0: i32, %arg1: i32, %arg2: memref<8x128xi32, #tpu.memory_space<vmem>>, %arg3: memref<8x8x384xf32, #tpu.memory_space<vmem>>, %arg4: memref<128x384xf32, #tpu.memory_space<vmem>>, %arg5: memref<1x128xf32, #tpu.memory_space<vmem>>, %arg6: memref<8x8x128xf32, #tpu.memory_space<vmem>>, %arg7: memref<8x128xf32, #tpu.memory_space<vmem>>, %arg8: memref<8x128xf32, #tpu.memory_space<vmem>>) attributes {dimension_semantics = [#tpu.dimension_semantics<parallel>, #tpu.dimension_semantics<arbitrary>], iteration_bounds = array<i64: 1, 1>, scalar_prefetch = 0 : i64, scratch_operands = 1 : i64, tpu.core_type = #tpu.core_type<tc>, window_params = [{transform_indices = @transform_0, window_bounds = array<i64: 8, 128>}, {transform_indices = @transform_1, window_bounds = array<i64: 8, 8, 384>}, {pipeline_mode = #tpu.pipeline_mode<synchronous>, transform_indices = @transform_2, window_bounds = array<i64: 128, 384>}, {pipeline_mode = #tpu.pipeline_mode<synchronous>, transform_indices = @transform_3, window_bounds = array<i64: 1, 128>}, {transform_indices = @transform_4, window_bounds = array<i64: 8, 8, 128>}, {transform_indices = @transform_5, window_bounds = array<i64: 8, 128>}]} {
    %c0_i32 = arith.constant 0 : i32
    %0 = arith.cmpi eq, %arg1, %c0_i32 : i32
    %1 = arith.extui %0 : i1 to i32
    %c0_i32_0 = arith.constant 0 : i32
    %2 = arith.cmpi ne, %1, %c0_i32_0 : i32
    scf.if %2 {
      %cst_127 = arith.constant 0.000000e+00 : f32
      %393 = vector.broadcast %cst_127 : f32 to vector<8x128xf32>
      %c0_128 = arith.constant 0 : index
      %c0_129 = arith.constant 0 : index
      %394 = vector.load %arg8[%c0_128, %c0_129] : memref<8x128xf32, #tpu.memory_space<vmem>>, vector<8x128xf32>
      tpu.vector_store %arg8[%c0_128, %c0_129], %393 {strides = array<i32>} : memref<8x128xf32, #tpu.memory_space<vmem>>, vector<8x128xf32>,
    } else {
    }
    %c0 = arith.constant 0 : index
    %c0_1 = arith.constant 0 : index
    %3 = vector.load %arg2[%c0, %c0_1] : memref<8x128xi32, #tpu.memory_space<vmem>>, vector<8x1xi32>
    %c0_2 = arith.constant 0 : index
    %c0_3 = arith.constant 0 : index
    %4 = vector.load %arg5[%c0_2, %c0_3] : memref<1x128xf32, #tpu.memory_space<vmem>>, vector<1x128xf32>
    %c8_i32 = arith.constant 8 : i32
    %5 = arith.muli %arg1, %c8_i32 : i32
    %c0_i32_4 = arith.constant 0 : i32
    %c0_5 = arith.constant 0 : index
    %c0_6 = arith.constant 0 : index
    %6 = vector.load %arg8[%c0_5, %c0_6] : memref<8x128xf32, #tpu.memory_space<vmem>>, vector<8x128xf32>
    %7 = arith.index_cast %c0_i32_4 : i32 to index
    %c0_7 = arith.constant 0 : index
    %c0_8 = arith.constant 0 : index
    %8 = vector.load %arg3[%7, %c0_7, %c0_8] : memref<8x8x384xf32, #tpu.memory_space<vmem>>, vector<1x8x384xf32>
    %9 = vector.shape_cast %8 : vector<1x8x384xf32> to vector<8x384xf32>
    %c0_9 = arith.constant 0 : index
    %c0_10 = arith.constant 0 : index
    %10 = vector.load %arg4[%c0_9, %c0_10] : memref<128x384xf32, #tpu.memory_space<vmem>>, vector<128x384xf32>
    %cst = arith.constant dense<0.000000e+00> : vector<8x384xf32>
    %11 = tpu.matmul %6, %10, %cst {dimension_numbers = #tpu.dot_dimension_numbers<[1], [0], [0], [1], [0, 0, 1, 1], [], []>} : vector<8x128xf32>, vector<128x384xf32>, vector<8x384xf32> -> vector<8x384xf32>
    %12 = vector.extract_strided_slice %9 {offsets = [0, 0], sizes = [8, 128], strides = [1, 1]} : vector<8x384xf32> to vector<8x128xf32>
    %13 = vector.extract_strided_slice %11 {offsets = [0, 0], sizes = [8, 128], strides = [1, 1]} : vector<8x384xf32> to vector<8x128xf32>
    %14 = arith.addf %12, %13 : vector<8x128xf32>
    %15 = arith.negf %14 : vector<8x128xf32>
    %16 = math.exp %15 : vector<8x128xf32>
    %cst_11 = arith.constant 1.000000e+00 : f32
    %17 = vector.broadcast %cst_11 : f32 to vector<8x128xf32>
    %18 = arith.addf %17, %16 : vector<8x128xf32>
    %19 = arith.divf %17, %18 : vector<8x128xf32>
    %20 = vector.extract_strided_slice %9 {offsets = [0, 128], sizes = [8, 128], strides = [1, 1]} : vector<8x384xf32> to vector<8x128xf32>
    %21 = vector.extract_strided_slice %11 {offsets = [0, 128], sizes = [8, 128], strides = [1, 1]} : vector<8x384xf32> to vector<8x128xf32>
    %22 = arith.addf %20, %21 : vector<8x128xf32>
    %23 = arith.negf %22 : vector<8x128xf32>
    %24 = math.exp %23 : vector<8x128xf32>
    %cst_12 = arith.constant 1.000000e+00 : f32
    %25 = vector.broadcast %cst_12 : f32 to vector<8x128xf32>
    %26 = arith.addf %25, %24 : vector<8x128xf32>
    %27 = arith.divf %25, %26 : vector<8x128xf32>
    %28 = vector.extract_strided_slice %9 {offsets = [0, 256], sizes = [8, 128], strides = [1, 1]} : vector<8x384xf32> to vector<8x128xf32>
    %29 = vector.extract_strided_slice %11 {offsets = [0, 256], sizes = [8, 128], strides = [1, 1]} : vector<8x384xf32> to vector<8x128xf32>
    %30 = vector.broadcast %4 : vector<1x128xf32> to vector<8x128xf32>
    %31 = arith.addf %29, %30 : vector<8x128xf32>
    %32 = arith.mulf %19, %31 : vector<8x128xf32>
    %33 = arith.addf %28, %32 : vector<8x128xf32>
    %34 = math.tanh %33 : vector<8x128xf32>
    %cst_13 = arith.constant 1.000000e+00 : f32
    %35 = vector.broadcast %cst_13 : f32 to vector<8x128xf32>
    %36 = arith.subf %35, %27 : vector<8x128xf32>
    %37 = arith.mulf %36, %34 : vector<8x128xf32>
    %38 = arith.mulf %27, %6 : vector<8x128xf32>
    %39 = arith.addf %37, %38 : vector<8x128xf32>
    %40 = arith.addi %5, %c0_i32_4 : i32
    %41 = vector.broadcast %40 : i32 to vector<8x1xi32>
    %42 = arith.cmpi slt, %41, %3 : vector<8x1xi32>
    %43 = vector.shape_cast %42 : vector<8x1xi1> to vector<8x1xi1>
    %44 = vector.broadcast %43 : vector<8x1xi1> to vector<8x128xi1>
    %45 = arith.select %44, %39, %6 : vector<8x128xi1>, vector<8x128xf32>
    %c0_14 = arith.constant 0 : index
    %c0_15 = arith.constant 0 : index
    %46 = vector.load %arg8[%c0_14, %c0_15] : memref<8x128xf32, #tpu.memory_space<vmem>>, vector<8x128xf32>
    tpu.vector_store %arg8[%c0_14, %c0_15], %45 {strides = array<i32>} : memref<8x128xf32, #tpu.memory_space<vmem>>, vector<8x128xf32>,
    %cst_16 = arith.constant 0.000000e+00 : f32
    %47 = vector.shape_cast %42 : vector<8x1xi1> to vector<8x1xi1>
    %48 = vector.broadcast %47 : vector<8x1xi1> to vector<8x128xi1>
    %49 = vector.broadcast %cst_16 : f32 to vector<8x128xf32>
    %50 = arith.select %48, %39, %49 : vector<8x128xi1>, vector<8x128xf32>
    %51 = vector.shape_cast %50 : vector<8x128xf32> to vector<1x8x128xf32>
    %52 = arith.index_cast %c0_i32_4 : i32 to index
    %c0_17 = arith.constant 0 : index
    %c0_18 = arith.constant 0 : index
    %53 = vector.load %arg6[%52, %c0_17, %c0_18] : memref<8x8x128xf32, #tpu.memory_space<vmem>>, vector<1x8x128xf32>
    tpu.vector_store %arg6[%52, %c0_17, %c0_18], %51 {strides = array<i32>} : memref<8x8x128xf32, #tpu.memory_space<vmem>>, vector<1x8x128xf32>,
    %c1_i32 = arith.constant 1 : i32
    %c0_19 = arith.constant 0 : index
    %c0_20 = arith.constant 0 : index
    %54 = vector.load %arg8[%c0_19, %c0_20] : memref<8x128xf32, #tpu.memory_space<vmem>>, vector<8x128xf32>
    %55 = arith.index_cast %c1_i32 : i32 to index
    %c0_21 = arith.constant 0 : index
    %c0_22 = arith.constant 0 : index
    %56 = vector.load %arg3[%55, %c0_21, %c0_22] : memref<8x8x384xf32, #tpu.memory_space<vmem>>, vector<1x8x384xf32>
    %57 = vector.shape_cast %56 : vector<1x8x384xf32> to vector<8x384xf32>
    %c0_23 = arith.constant 0 : index
    %c0_24 = arith.constant 0 : index
    %58 = vector.load %arg4[%c0_23, %c0_24] : memref<128x384xf32, #tpu.memory_space<vmem>>, vector<128x384xf32>
    %cst_25 = arith.constant dense<0.000000e+00> : vector<8x384xf32>
    %59 = tpu.matmul %54, %58, %cst_25 {dimension_numbers = #tpu.dot_dimension_numbers<[1], [0], [0], [1], [0, 0, 1, 1], [], []>} : vector<8x128xf32>, vector<128x384xf32>, vector<8x384xf32> -> vector<8x384xf32>
    %60 = vector.extract_strided_slice %57 {offsets = [0, 0], sizes = [8, 128], strides = [1, 1]} : vector<8x384xf32> to vector<8x128xf32>
    %61 = vector.extract_strided_slice %59 {offsets = [0, 0], sizes = [8, 128], strides = [1, 1]} : vector<8x384xf32> to vector<8x128xf32>
    %62 = arith.addf %60, %61 : vector<8x128xf32>
    %63 = arith.negf %62 : vector<8x128xf32>
    %64 = math.exp %63 : vector<8x128xf32>
    %cst_26 = arith.constant 1.000000e+00 : f32
    %65 = vector.broadcast %cst_26 : f32 to vector<8x128xf32>
    %66 = arith.addf %65, %64 : vector<8x128xf32>
    %67 = arith.divf %65, %66 : vector<8x128xf32>
    %68 = vector.extract_strided_slice %57 {offsets = [0, 128], sizes = [8, 128], strides = [1, 1]} : vector<8x384xf32> to vector<8x128xf32>
    %69 = vector.extract_strided_slice %59 {offsets = [0, 128], sizes = [8, 128], strides = [1, 1]} : vector<8x384xf32> to vector<8x128xf32>
    %70 = arith.addf %68, %69 : vector<8x128xf32>
    %71 = arith.negf %70 : vector<8x128xf32>
    %72 = math.exp %71 : vector<8x128xf32>
    %cst_27 = arith.constant 1.000000e+00 : f32
    %73 = vector.broadcast %cst_27 : f32 to vector<8x128xf32>
    %74 = arith.addf %73, %72 : vector<8x128xf32>
    %75 = arith.divf %73, %74 : vector<8x128xf32>
    %76 = vector.extract_strided_slice %57 {offsets = [0, 256], sizes = [8, 128], strides = [1, 1]} : vector<8x384xf32> to vector<8x128xf32>
    %77 = vector.extract_strided_slice %59 {offsets = [0, 256], sizes = [8, 128], strides = [1, 1]} : vector<8x384xf32> to vector<8x128xf32>
    %78 = vector.broadcast %4 : vector<1x128xf32> to vector<8x128xf32>
    %79 = arith.addf %77, %78 : vector<8x128xf32>
    %80 = arith.mulf %67, %79 : vector<8x128xf32>
    %81 = arith.addf %76, %80 : vector<8x128xf32>
    %82 = math.tanh %81 : vector<8x128xf32>
    %cst_28 = arith.constant 1.000000e+00 : f32
    %83 = vector.broadcast %cst_28 : f32 to vector<8x128xf32>
    %84 = arith.subf %83, %75 : vector<8x128xf32>
    %85 = arith.mulf %84, %82 : vector<8x128xf32>
    %86 = arith.mulf %75, %54 : vector<8x128xf32>
    %87 = arith.addf %85, %86 : vector<8x128xf32>
    %88 = arith.addi %5, %c1_i32 : i32
    %89 = vector.broadcast %88 : i32 to vector<8x1xi32>
    %90 = arith.cmpi slt, %89, %3 : vector<8x1xi32>
    %91 = vector.shape_cast %90 : vector<8x1xi1> to vector<8x1xi1>
    %92 = vector.broadcast %91 : vector<8x1xi1> to vector<8x128xi1>
    %93 = arith.select %92, %87, %54 : vector<8x128xi1>, vector<8x128xf32>
    %c0_29 = arith.constant 0 : index
    %c0_30 = arith.constant 0 : index
    %94 = vector.load %arg8[%c0_29, %c0_30] : memref<8x128xf32, #tpu.memory_space<vmem>>, vector<8x128xf32>
    tpu.vector_store %arg8[%c0_29, %c0_30], %93 {strides = array<i32>} : memref<8x128xf32, #tpu.memory_space<vmem>>, vector<8x128xf32>,
    %cst_31 = arith.constant 0.000000e+00 : f32
    %95 = vector.shape_cast %90 : vector<8x1xi1> to vector<8x1xi1>
    %96 = vector.broadcast %95 : vector<8x1xi1> to vector<8x128xi1>
    %97 = vector.broadcast %cst_31 : f32 to vector<8x128xf32>
    %98 = arith.select %96, %87, %97 : vector<8x128xi1>, vector<8x128xf32>
    %99 = vector.shape_cast %98 : vector<8x128xf32> to vector<1x8x128xf32>
    %100 = arith.index_cast %c1_i32 : i32 to index
    %c0_32 = arith.constant 0 : index
    %c0_33 = arith.constant 0 : index
    %101 = vector.load %arg6[%100, %c0_32, %c0_33] : memref<8x8x128xf32, #tpu.memory_space<vmem>>, vector<1x8x128xf32>
    tpu.vector_store %arg6[%100, %c0_32, %c0_33], %99 {strides = array<i32>} : memref<8x8x128xf32, #tpu.memory_space<vmem>>, vector<1x8x128xf32>,
    %c2_i32 = arith.constant 2 : i32
    %c0_34 = arith.constant 0 : index
    %c0_35 = arith.constant 0 : index
    %102 = vector.load %arg8[%c0_34, %c0_35] : memref<8x128xf32, #tpu.memory_space<vmem>>, vector<8x128xf32>
    %103 = arith.index_cast %c2_i32 : i32 to index
    %c0_36 = arith.constant 0 : index
    %c0_37 = arith.constant 0 : index
    %104 = vector.load %arg3[%103, %c0_36, %c0_37] : memref<8x8x384xf32, #tpu.memory_space<vmem>>, vector<1x8x384xf32>
    %105 = vector.shape_cast %104 : vector<1x8x384xf32> to vector<8x384xf32>
    %c0_38 = arith.constant 0 : index
    %c0_39 = arith.constant 0 : index
    %106 = vector.load %arg4[%c0_38, %c0_39] : memref<128x384xf32, #tpu.memory_space<vmem>>, vector<128x384xf32>
    %cst_40 = arith.constant dense<0.000000e+00> : vector<8x384xf32>
    %107 = tpu.matmul %102, %106, %cst_40 {dimension_numbers = #tpu.dot_dimension_numbers<[1], [0], [0], [1], [0, 0, 1, 1], [], []>} : vector<8x128xf32>, vector<128x384xf32>, vector<8x384xf32> -> vector<8x384xf32>
    %108 = vector.extract_strided_slice %105 {offsets = [0, 0], sizes = [8, 128], strides = [1, 1]} : vector<8x384xf32> to vector<8x128xf32>
    %109 = vector.extract_strided_slice %107 {offsets = [0, 0], sizes = [8, 128], strides = [1, 1]} : vector<8x384xf32> to vector<8x128xf32>
    %110 = arith.addf %108, %109 : vector<8x128xf32>
    %111 = arith.negf %110 : vector<8x128xf32>
    %112 = math.exp %111 : vector<8x128xf32>
    %cst_41 = arith.constant 1.000000e+00 : f32
    %113 = vector.broadcast %cst_41 : f32 to vector<8x128xf32>
    %114 = arith.addf %113, %112 : vector<8x128xf32>
    %115 = arith.divf %113, %114 : vector<8x128xf32>
    %116 = vector.extract_strided_slice %105 {offsets = [0, 128], sizes = [8, 128], strides = [1, 1]} : vector<8x384xf32> to vector<8x128xf32>
    %117 = vector.extract_strided_slice %107 {offsets = [0, 128], sizes = [8, 128], strides = [1, 1]} : vector<8x384xf32> to vector<8x128xf32>
    %118 = arith.addf %116, %117 : vector<8x128xf32>
    %119 = arith.negf %118 : vector<8x128xf32>
    %120 = math.exp %119 : vector<8x128xf32>
    %cst_42 = arith.constant 1.000000e+00 : f32
    %121 = vector.broadcast %cst_42 : f32 to vector<8x128xf32>
    %122 = arith.addf %121, %120 : vector<8x128xf32>
    %123 = arith.divf %121, %122 : vector<8x128xf32>
    %124 = vector.extract_strided_slice %105 {offsets = [0, 256], sizes = [8, 128], strides = [1, 1]} : vector<8x384xf32> to vector<8x128xf32>
    %125 = vector.extract_strided_slice %107 {offsets = [0, 256], sizes = [8, 128], strides = [1, 1]} : vector<8x384xf32> to vector<8x128xf32>
    %126 = vector.broadcast %4 : vector<1x128xf32> to vector<8x128xf32>
    %127 = arith.addf %125, %126 : vector<8x128xf32>
    %128 = arith.mulf %115, %127 : vector<8x128xf32>
    %129 = arith.addf %124, %128 : vector<8x128xf32>
    %130 = math.tanh %129 : vector<8x128xf32>
    %cst_43 = arith.constant 1.000000e+00 : f32
    %131 = vector.broadcast %cst_43 : f32 to vector<8x128xf32>
    %132 = arith.subf %131, %123 : vector<8x128xf32>
    %133 = arith.mulf %132, %130 : vector<8x128xf32>
    %134 = arith.mulf %123, %102 : vector<8x128xf32>
    %135 = arith.addf %133, %134 : vector<8x128xf32>
    %136 = arith.addi %5, %c2_i32 : i32
    %137 = vector.broadcast %136 : i32 to vector<8x1xi32>
    %138 = arith.cmpi slt, %137, %3 : vector<8x1xi32>
    %139 = vector.shape_cast %138 : vector<8x1xi1> to vector<8x1xi1>
    %140 = vector.broadcast %139 : vector<8x1xi1> to vector<8x128xi1>
    %141 = arith.select %140, %135, %102 : vector<8x128xi1>, vector<8x128xf32>
    %c0_44 = arith.constant 0 : index
    %c0_45 = arith.constant 0 : index
    %142 = vector.load %arg8[%c0_44, %c0_45] : memref<8x128xf32, #tpu.memory_space<vmem>>, vector<8x128xf32>
    tpu.vector_store %arg8[%c0_44, %c0_45], %141 {strides = array<i32>} : memref<8x128xf32, #tpu.memory_space<vmem>>, vector<8x128xf32>,
    %cst_46 = arith.constant 0.000000e+00 : f32
    %143 = vector.shape_cast %138 : vector<8x1xi1> to vector<8x1xi1>
    %144 = vector.broadcast %143 : vector<8x1xi1> to vector<8x128xi1>
    %145 = vector.broadcast %cst_46 : f32 to vector<8x128xf32>
    %146 = arith.select %144, %135, %145 : vector<8x128xi1>, vector<8x128xf32>
    %147 = vector.shape_cast %146 : vector<8x128xf32> to vector<1x8x128xf32>
    %148 = arith.index_cast %c2_i32 : i32 to index
    %c0_47 = arith.constant 0 : index
    %c0_48 = arith.constant 0 : index
    %149 = vector.load %arg6[%148, %c0_47, %c0_48] : memref<8x8x128xf32, #tpu.memory_space<vmem>>, vector<1x8x128xf32>
    tpu.vector_store %arg6[%148, %c0_47, %c0_48], %147 {strides = array<i32>} : memref<8x8x128xf32, #tpu.memory_space<vmem>>, vector<1x8x128xf32>,
    %c3_i32 = arith.constant 3 : i32
    %c0_49 = arith.constant 0 : index
    %c0_50 = arith.constant 0 : index
    %150 = vector.load %arg8[%c0_49, %c0_50] : memref<8x128xf32, #tpu.memory_space<vmem>>, vector<8x128xf32>
    %151 = arith.index_cast %c3_i32 : i32 to index
    %c0_51 = arith.constant 0 : index
    %c0_52 = arith.constant 0 : index
    %152 = vector.load %arg3[%151, %c0_51, %c0_52] : memref<8x8x384xf32, #tpu.memory_space<vmem>>, vector<1x8x384xf32>
    %153 = vector.shape_cast %152 : vector<1x8x384xf32> to vector<8x384xf32>
    %c0_53 = arith.constant 0 : index
    %c0_54 = arith.constant 0 : index
    %154 = vector.load %arg4[%c0_53, %c0_54] : memref<128x384xf32, #tpu.memory_space<vmem>>, vector<128x384xf32>
    %cst_55 = arith.constant dense<0.000000e+00> : vector<8x384xf32>
    %155 = tpu.matmul %150, %154, %cst_55 {dimension_numbers = #tpu.dot_dimension_numbers<[1], [0], [0], [1], [0, 0, 1, 1], [], []>} : vector<8x128xf32>, vector<128x384xf32>, vector<8x384xf32> -> vector<8x384xf32>
    %156 = vector.extract_strided_slice %153 {offsets = [0, 0], sizes = [8, 128], strides = [1, 1]} : vector<8x384xf32> to vector<8x128xf32>
    %157 = vector.extract_strided_slice %155 {offsets = [0, 0], sizes = [8, 128], strides = [1, 1]} : vector<8x384xf32> to vector<8x128xf32>
    %158 = arith.addf %156, %157 : vector<8x128xf32>
    %159 = arith.negf %158 : vector<8x128xf32>
    %160 = math.exp %159 : vector<8x128xf32>
    %cst_56 = arith.constant 1.000000e+00 : f32
    %161 = vector.broadcast %cst_56 : f32 to vector<8x128xf32>
    %162 = arith.addf %161, %160 : vector<8x128xf32>
    %163 = arith.divf %161, %162 : vector<8x128xf32>
    %164 = vector.extract_strided_slice %153 {offsets = [0, 128], sizes = [8, 128], strides = [1, 1]} : vector<8x384xf32> to vector<8x128xf32>
    %165 = vector.extract_strided_slice %155 {offsets = [0, 128], sizes = [8, 128], strides = [1, 1]} : vector<8x384xf32> to vector<8x128xf32>
    %166 = arith.addf %164, %165 : vector<8x128xf32>
    %167 = arith.negf %166 : vector<8x128xf32>
    %168 = math.exp %167 : vector<8x128xf32>
    %cst_57 = arith.constant 1.000000e+00 : f32
    %169 = vector.broadcast %cst_57 : f32 to vector<8x128xf32>
    %170 = arith.addf %169, %168 : vector<8x128xf32>
    %171 = arith.divf %169, %170 : vector<8x128xf32>
    %172 = vector.extract_strided_slice %153 {offsets = [0, 256], sizes = [8, 128], strides = [1, 1]} : vector<8x384xf32> to vector<8x128xf32>
    %173 = vector.extract_strided_slice %155 {offsets = [0, 256], sizes = [8, 128], strides = [1, 1]} : vector<8x384xf32> to vector<8x128xf32>
    %174 = vector.broadcast %4 : vector<1x128xf32> to vector<8x128xf32>
    %175 = arith.addf %173, %174 : vector<8x128xf32>
    %176 = arith.mulf %163, %175 : vector<8x128xf32>
    %177 = arith.addf %172, %176 : vector<8x128xf32>
    %178 = math.tanh %177 : vector<8x128xf32>
    %cst_58 = arith.constant 1.000000e+00 : f32
    %179 = vector.broadcast %cst_58 : f32 to vector<8x128xf32>
    %180 = arith.subf %179, %171 : vector<8x128xf32>
    %181 = arith.mulf %180, %178 : vector<8x128xf32>
    %182 = arith.mulf %171, %150 : vector<8x128xf32>
    %183 = arith.addf %181, %182 : vector<8x128xf32>
    %184 = arith.addi %5, %c3_i32 : i32
    %185 = vector.broadcast %184 : i32 to vector<8x1xi32>
    %186 = arith.cmpi slt, %185, %3 : vector<8x1xi32>
    %187 = vector.shape_cast %186 : vector<8x1xi1> to vector<8x1xi1>
    %188 = vector.broadcast %187 : vector<8x1xi1> to vector<8x128xi1>
    %189 = arith.select %188, %183, %150 : vector<8x128xi1>, vector<8x128xf32>
    %c0_59 = arith.constant 0 : index
    %c0_60 = arith.constant 0 : index
    %190 = vector.load %arg8[%c0_59, %c0_60] : memref<8x128xf32, #tpu.memory_space<vmem>>, vector<8x128xf32>
    tpu.vector_store %arg8[%c0_59, %c0_60], %189 {strides = array<i32>} : memref<8x128xf32, #tpu.memory_space<vmem>>, vector<8x128xf32>,
    %cst_61 = arith.constant 0.000000e+00 : f32
    %191 = vector.shape_cast %186 : vector<8x1xi1> to vector<8x1xi1>
    %192 = vector.broadcast %191 : vector<8x1xi1> to vector<8x128xi1>
    %193 = vector.broadcast %cst_61 : f32 to vector<8x128xf32>
    %194 = arith.select %192, %183, %193 : vector<8x128xi1>, vector<8x128xf32>
    %195 = vector.shape_cast %194 : vector<8x128xf32> to vector<1x8x128xf32>
    %196 = arith.index_cast %c3_i32 : i32 to index
    %c0_62 = arith.constant 0 : index
    %c0_63 = arith.constant 0 : index
    %197 = vector.load %arg6[%196, %c0_62, %c0_63] : memref<8x8x128xf32, #tpu.memory_space<vmem>>, vector<1x8x128xf32>
    tpu.vector_store %arg6[%196, %c0_62, %c0_63], %195 {strides = array<i32>} : memref<8x8x128xf32, #tpu.memory_space<vmem>>, vector<1x8x128xf32>,
    %c4_i32 = arith.constant 4 : i32
    %c0_64 = arith.constant 0 : index
    %c0_65 = arith.constant 0 : index
    %198 = vector.load %arg8[%c0_64, %c0_65] : memref<8x128xf32, #tpu.memory_space<vmem>>, vector<8x128xf32>
    %199 = arith.index_cast %c4_i32 : i32 to index
    %c0_66 = arith.constant 0 : index
    %c0_67 = arith.constant 0 : index
    %200 = vector.load %arg3[%199, %c0_66, %c0_67] : memref<8x8x384xf32, #tpu.memory_space<vmem>>, vector<1x8x384xf32>
    %201 = vector.shape_cast %200 : vector<1x8x384xf32> to vector<8x384xf32>
    %c0_68 = arith.constant 0 : index
    %c0_69 = arith.constant 0 : index
    %202 = vector.load %arg4[%c0_68, %c0_69] : memref<128x384xf32, #tpu.memory_space<vmem>>, vector<128x384xf32>
    %cst_70 = arith.constant dense<0.000000e+00> : vector<8x384xf32>
    %203 = tpu.matmul %198, %202, %cst_70 {dimension_numbers = #tpu.dot_dimension_numbers<[1], [0], [0], [1], [0, 0, 1, 1], [], []>} : vector<8x128xf32>, vector<128x384xf32>, vector<8x384xf32> -> vector<8x384xf32>
    %204 = vector.extract_strided_slice %201 {offsets = [0, 0], sizes = [8, 128], strides = [1, 1]} : vector<8x384xf32> to vector<8x128xf32>
    %205 = vector.extract_strided_slice %203 {offsets = [0, 0], sizes = [8, 128], strides = [1, 1]} : vector<8x384xf32> to vector<8x128xf32>
    %206 = arith.addf %204, %205 : vector<8x128xf32>
    %207 = arith.negf %206 : vector<8x128xf32>
    %208 = math.exp %207 : vector<8x128xf32>
    %cst_71 = arith.constant 1.000000e+00 : f32
    %209 = vector.broadcast %cst_71 : f32 to vector<8x128xf32>
    %210 = arith.addf %209, %208 : vector<8x128xf32>
    %211 = arith.divf %209, %210 : vector<8x128xf32>
    %212 = vector.extract_strided_slice %201 {offsets = [0, 128], sizes = [8, 128], strides = [1, 1]} : vector<8x384xf32> to vector<8x128xf32>
    %213 = vector.extract_strided_slice %203 {offsets = [0, 128], sizes = [8, 128], strides = [1, 1]} : vector<8x384xf32> to vector<8x128xf32>
    %214 = arith.addf %212, %213 : vector<8x128xf32>
    %215 = arith.negf %214 : vector<8x128xf32>
    %216 = math.exp %215 : vector<8x128xf32>
    %cst_72 = arith.constant 1.000000e+00 : f32
    %217 = vector.broadcast %cst_72 : f32 to vector<8x128xf32>
    %218 = arith.addf %217, %216 : vector<8x128xf32>
    %219 = arith.divf %217, %218 : vector<8x128xf32>
    %220 = vector.extract_strided_slice %201 {offsets = [0, 256], sizes = [8, 128], strides = [1, 1]} : vector<8x384xf32> to vector<8x128xf32>
    %221 = vector.extract_strided_slice %203 {offsets = [0, 256], sizes = [8, 128], strides = [1, 1]} : vector<8x384xf32> to vector<8x128xf32>
    %222 = vector.broadcast %4 : vector<1x128xf32> to vector<8x128xf32>
    %223 = arith.addf %221, %222 : vector<8x128xf32>
    %224 = arith.mulf %211, %223 : vector<8x128xf32>
    %225 = arith.addf %220, %224 : vector<8x128xf32>
    %226 = math.tanh %225 : vector<8x128xf32>
    %cst_73 = arith.constant 1.000000e+00 : f32
    %227 = vector.broadcast %cst_73 : f32 to vector<8x128xf32>
    %228 = arith.subf %227, %219 : vector<8x128xf32>
    %229 = arith.mulf %228, %226 : vector<8x128xf32>
    %230 = arith.mulf %219, %198 : vector<8x128xf32>
    %231 = arith.addf %229, %230 : vector<8x128xf32>
    %232 = arith.addi %5, %c4_i32 : i32
    %233 = vector.broadcast %232 : i32 to vector<8x1xi32>
    %234 = arith.cmpi slt, %233, %3 : vector<8x1xi32>
    %235 = vector.shape_cast %234 : vector<8x1xi1> to vector<8x1xi1>
    %236 = vector.broadcast %235 : vector<8x1xi1> to vector<8x128xi1>
    %237 = arith.select %236, %231, %198 : vector<8x128xi1>, vector<8x128xf32>
    %c0_74 = arith.constant 0 : index
    %c0_75 = arith.constant 0 : index
    %238 = vector.load %arg8[%c0_74, %c0_75] : memref<8x128xf32, #tpu.memory_space<vmem>>, vector<8x128xf32>
    tpu.vector_store %arg8[%c0_74, %c0_75], %237 {strides = array<i32>} : memref<8x128xf32, #tpu.memory_space<vmem>>, vector<8x128xf32>,
    %cst_76 = arith.constant 0.000000e+00 : f32
    %239 = vector.shape_cast %234 : vector<8x1xi1> to vector<8x1xi1>
    %240 = vector.broadcast %239 : vector<8x1xi1> to vector<8x128xi1>
    %241 = vector.broadcast %cst_76 : f32 to vector<8x128xf32>
    %242 = arith.select %240, %231, %241 : vector<8x128xi1>, vector<8x128xf32>
    %243 = vector.shape_cast %242 : vector<8x128xf32> to vector<1x8x128xf32>
    %244 = arith.index_cast %c4_i32 : i32 to index
    %c0_77 = arith.constant 0 : index
    %c0_78 = arith.constant 0 : index
    %245 = vector.load %arg6[%244, %c0_77, %c0_78] : memref<8x8x128xf32, #tpu.memory_space<vmem>>, vector<1x8x128xf32>
    tpu.vector_store %arg6[%244, %c0_77, %c0_78], %243 {strides = array<i32>} : memref<8x8x128xf32, #tpu.memory_space<vmem>>, vector<1x8x128xf32>,
    %c5_i32 = arith.constant 5 : i32
    %c0_79 = arith.constant 0 : index
    %c0_80 = arith.constant 0 : index
    %246 = vector.load %arg8[%c0_79, %c0_80] : memref<8x128xf32, #tpu.memory_space<vmem>>, vector<8x128xf32>
    %247 = arith.index_cast %c5_i32 : i32 to index
    %c0_81 = arith.constant 0 : index
    %c0_82 = arith.constant 0 : index
    %248 = vector.load %arg3[%247, %c0_81, %c0_82] : memref<8x8x384xf32, #tpu.memory_space<vmem>>, vector<1x8x384xf32>
    %249 = vector.shape_cast %248 : vector<1x8x384xf32> to vector<8x384xf32>
    %c0_83 = arith.constant 0 : index
    %c0_84 = arith.constant 0 : index
    %250 = vector.load %arg4[%c0_83, %c0_84] : memref<128x384xf32, #tpu.memory_space<vmem>>, vector<128x384xf32>
    %cst_85 = arith.constant dense<0.000000e+00> : vector<8x384xf32>
    %251 = tpu.matmul %246, %250, %cst_85 {dimension_numbers = #tpu.dot_dimension_numbers<[1], [0], [0], [1], [0, 0, 1, 1], [], []>} : vector<8x128xf32>, vector<128x384xf32>, vector<8x384xf32> -> vector<8x384xf32>
    %252 = vector.extract_strided_slice %249 {offsets = [0, 0], sizes = [8, 128], strides = [1, 1]} : vector<8x384xf32> to vector<8x128xf32>
    %253 = vector.extract_strided_slice %251 {offsets = [0, 0], sizes = [8, 128], strides = [1, 1]} : vector<8x384xf32> to vector<8x128xf32>
    %254 = arith.addf %252, %253 : vector<8x128xf32>
    %255 = arith.negf %254 : vector<8x128xf32>
    %256 = math.exp %255 : vector<8x128xf32>
    %cst_86 = arith.constant 1.000000e+00 : f32
    %257 = vector.broadcast %cst_86 : f32 to vector<8x128xf32>
    %258 = arith.addf %257, %256 : vector<8x128xf32>
    %259 = arith.divf %257, %258 : vector<8x128xf32>
    %260 = vector.extract_strided_slice %249 {offsets = [0, 128], sizes = [8, 128], strides = [1, 1]} : vector<8x384xf32> to vector<8x128xf32>
    %261 = vector.extract_strided_slice %251 {offsets = [0, 128], sizes = [8, 128], strides = [1, 1]} : vector<8x384xf32> to vector<8x128xf32>
    %262 = arith.addf %260, %261 : vector<8x128xf32>
    %263 = arith.negf %262 : vector<8x128xf32>
    %264 = math.exp %263 : vector<8x128xf32>
    %cst_87 = arith.constant 1.000000e+00 : f32
    %265 = vector.broadcast %cst_87 : f32 to vector<8x128xf32>
    %266 = arith.addf %265, %264 : vector<8x128xf32>
    %267 = arith.divf %265, %266 : vector<8x128xf32>
    %268 = vector.extract_strided_slice %249 {offsets = [0, 256], sizes = [8, 128], strides = [1, 1]} : vector<8x384xf32> to vector<8x128xf32>
    %269 = vector.extract_strided_slice %251 {offsets = [0, 256], sizes = [8, 128], strides = [1, 1]} : vector<8x384xf32> to vector<8x128xf32>
    %270 = vector.broadcast %4 : vector<1x128xf32> to vector<8x128xf32>
    %271 = arith.addf %269, %270 : vector<8x128xf32>
    %272 = arith.mulf %259, %271 : vector<8x128xf32>
    %273 = arith.addf %268, %272 : vector<8x128xf32>
    %274 = math.tanh %273 : vector<8x128xf32>
    %cst_88 = arith.constant 1.000000e+00 : f32
    %275 = vector.broadcast %cst_88 : f32 to vector<8x128xf32>
    %276 = arith.subf %275, %267 : vector<8x128xf32>
    %277 = arith.mulf %276, %274 : vector<8x128xf32>
    %278 = arith.mulf %267, %246 : vector<8x128xf32>
    %279 = arith.addf %277, %278 : vector<8x128xf32>
    %280 = arith.addi %5, %c5_i32 : i32
    %281 = vector.broadcast %280 : i32 to vector<8x1xi32>
    %282 = arith.cmpi slt, %281, %3 : vector<8x1xi32>
    %283 = vector.shape_cast %282 : vector<8x1xi1> to vector<8x1xi1>
    %284 = vector.broadcast %283 : vector<8x1xi1> to vector<8x128xi1>
    %285 = arith.select %284, %279, %246 : vector<8x128xi1>, vector<8x128xf32>
    %c0_89 = arith.constant 0 : index
    %c0_90 = arith.constant 0 : index
    %286 = vector.load %arg8[%c0_89, %c0_90] : memref<8x128xf32, #tpu.memory_space<vmem>>, vector<8x128xf32>
    tpu.vector_store %arg8[%c0_89, %c0_90], %285 {strides = array<i32>} : memref<8x128xf32, #tpu.memory_space<vmem>>, vector<8x128xf32>,
    %cst_91 = arith.constant 0.000000e+00 : f32
    %287 = vector.shape_cast %282 : vector<8x1xi1> to vector<8x1xi1>
    %288 = vector.broadcast %287 : vector<8x1xi1> to vector<8x128xi1>
    %289 = vector.broadcast %cst_91 : f32 to vector<8x128xf32>
    %290 = arith.select %288, %279, %289 : vector<8x128xi1>, vector<8x128xf32>
    %291 = vector.shape_cast %290 : vector<8x128xf32> to vector<1x8x128xf32>
    %292 = arith.index_cast %c5_i32 : i32 to index
    %c0_92 = arith.constant 0 : index
    %c0_93 = arith.constant 0 : index
    %293 = vector.load %arg6[%292, %c0_92, %c0_93] : memref<8x8x128xf32, #tpu.memory_space<vmem>>, vector<1x8x128xf32>
    tpu.vector_store %arg6[%292, %c0_92, %c0_93], %291 {strides = array<i32>} : memref<8x8x128xf32, #tpu.memory_space<vmem>>, vector<1x8x128xf32>,
    %c6_i32 = arith.constant 6 : i32
    %c0_94 = arith.constant 0 : index
    %c0_95 = arith.constant 0 : index
    %294 = vector.load %arg8[%c0_94, %c0_95] : memref<8x128xf32, #tpu.memory_space<vmem>>, vector<8x128xf32>
    %295 = arith.index_cast %c6_i32 : i32 to index
    %c0_96 = arith.constant 0 : index
    %c0_97 = arith.constant 0 : index
    %296 = vector.load %arg3[%295, %c0_96, %c0_97] : memref<8x8x384xf32, #tpu.memory_space<vmem>>, vector<1x8x384xf32>
    %297 = vector.shape_cast %296 : vector<1x8x384xf32> to vector<8x384xf32>
    %c0_98 = arith.constant 0 : index
    %c0_99 = arith.constant 0 : index
    %298 = vector.load %arg4[%c0_98, %c0_99] : memref<128x384xf32, #tpu.memory_space<vmem>>, vector<128x384xf32>
    %cst_100 = arith.constant dense<0.000000e+00> : vector<8x384xf32>
    %299 = tpu.matmul %294, %298, %cst_100 {dimension_numbers = #tpu.dot_dimension_numbers<[1], [0], [0], [1], [0, 0, 1, 1], [], []>} : vector<8x128xf32>, vector<128x384xf32>, vector<8x384xf32> -> vector<8x384xf32>
    %300 = vector.extract_strided_slice %297 {offsets = [0, 0], sizes = [8, 128], strides = [1, 1]} : vector<8x384xf32> to vector<8x128xf32>
    %301 = vector.extract_strided_slice %299 {offsets = [0, 0], sizes = [8, 128], strides = [1, 1]} : vector<8x384xf32> to vector<8x128xf32>
    %302 = arith.addf %300, %301 : vector<8x128xf32>
    %303 = arith.negf %302 : vector<8x128xf32>
    %304 = math.exp %303 : vector<8x128xf32>
    %cst_101 = arith.constant 1.000000e+00 : f32
    %305 = vector.broadcast %cst_101 : f32 to vector<8x128xf32>
    %306 = arith.addf %305, %304 : vector<8x128xf32>
    %307 = arith.divf %305, %306 : vector<8x128xf32>
    %308 = vector.extract_strided_slice %297 {offsets = [0, 128], sizes = [8, 128], strides = [1, 1]} : vector<8x384xf32> to vector<8x128xf32>
    %309 = vector.extract_strided_slice %299 {offsets = [0, 128], sizes = [8, 128], strides = [1, 1]} : vector<8x384xf32> to vector<8x128xf32>
    %310 = arith.addf %308, %309 : vector<8x128xf32>
    %311 = arith.negf %310 : vector<8x128xf32>
    %312 = math.exp %311 : vector<8x128xf32>
    %cst_102 = arith.constant 1.000000e+00 : f32
    %313 = vector.broadcast %cst_102 : f32 to vector<8x128xf32>
    %314 = arith.addf %313, %312 : vector<8x128xf32>
    %315 = arith.divf %313, %314 : vector<8x128xf32>
    %316 = vector.extract_strided_slice %297 {offsets = [0, 256], sizes = [8, 128], strides = [1, 1]} : vector<8x384xf32> to vector<8x128xf32>
    %317 = vector.extract_strided_slice %299 {offsets = [0, 256], sizes = [8, 128], strides = [1, 1]} : vector<8x384xf32> to vector<8x128xf32>
    %318 = vector.broadcast %4 : vector<1x128xf32> to vector<8x128xf32>
    %319 = arith.addf %317, %318 : vector<8x128xf32>
    %320 = arith.mulf %307, %319 : vector<8x128xf32>
    %321 = arith.addf %316, %320 : vector<8x128xf32>
    %322 = math.tanh %321 : vector<8x128xf32>
    %cst_103 = arith.constant 1.000000e+00 : f32
    %323 = vector.broadcast %cst_103 : f32 to vector<8x128xf32>
    %324 = arith.subf %323, %315 : vector<8x128xf32>
    %325 = arith.mulf %324, %322 : vector<8x128xf32>
    %326 = arith.mulf %315, %294 : vector<8x128xf32>
    %327 = arith.addf %325, %326 : vector<8x128xf32>
    %328 = arith.addi %5, %c6_i32 : i32
    %329 = vector.broadcast %328 : i32 to vector<8x1xi32>
    %330 = arith.cmpi slt, %329, %3 : vector<8x1xi32>
    %331 = vector.shape_cast %330 : vector<8x1xi1> to vector<8x1xi1>
    %332 = vector.broadcast %331 : vector<8x1xi1> to vector<8x128xi1>
    %333 = arith.select %332, %327, %294 : vector<8x128xi1>, vector<8x128xf32>
    %c0_104 = arith.constant 0 : index
    %c0_105 = arith.constant 0 : index
    %334 = vector.load %arg8[%c0_104, %c0_105] : memref<8x128xf32, #tpu.memory_space<vmem>>, vector<8x128xf32>
    tpu.vector_store %arg8[%c0_104, %c0_105], %333 {strides = array<i32>} : memref<8x128xf32, #tpu.memory_space<vmem>>, vector<8x128xf32>,
    %cst_106 = arith.constant 0.000000e+00 : f32
    %335 = vector.shape_cast %330 : vector<8x1xi1> to vector<8x1xi1>
    %336 = vector.broadcast %335 : vector<8x1xi1> to vector<8x128xi1>
    %337 = vector.broadcast %cst_106 : f32 to vector<8x128xf32>
    %338 = arith.select %336, %327, %337 : vector<8x128xi1>, vector<8x128xf32>
    %339 = vector.shape_cast %338 : vector<8x128xf32> to vector<1x8x128xf32>
    %340 = arith.index_cast %c6_i32 : i32 to index
    %c0_107 = arith.constant 0 : index
    %c0_108 = arith.constant 0 : index
    %341 = vector.load %arg6[%340, %c0_107, %c0_108] : memref<8x8x128xf32, #tpu.memory_space<vmem>>, vector<1x8x128xf32>
    tpu.vector_store %arg6[%340, %c0_107, %c0_108], %339 {strides = array<i32>} : memref<8x8x128xf32, #tpu.memory_space<vmem>>, vector<1x8x128xf32>,
    %c7_i32 = arith.constant 7 : i32
    %c0_109 = arith.constant 0 : index
    %c0_110 = arith.constant 0 : index
    %342 = vector.load %arg8[%c0_109, %c0_110] : memref<8x128xf32, #tpu.memory_space<vmem>>, vector<8x128xf32>
    %343 = arith.index_cast %c7_i32 : i32 to index
    %c0_111 = arith.constant 0 : index
    %c0_112 = arith.constant 0 : index
    %344 = vector.load %arg3[%343, %c0_111, %c0_112] : memref<8x8x384xf32, #tpu.memory_space<vmem>>, vector<1x8x384xf32>
    %345 = vector.shape_cast %344 : vector<1x8x384xf32> to vector<8x384xf32>
    %c0_113 = arith.constant 0 : index
    %c0_114 = arith.constant 0 : index
    %346 = vector.load %arg4[%c0_113, %c0_114] : memref<128x384xf32, #tpu.memory_space<vmem>>, vector<128x384xf32>
    %cst_115 = arith.constant dense<0.000000e+00> : vector<8x384xf32>
    %347 = tpu.matmul %342, %346, %cst_115 {dimension_numbers = #tpu.dot_dimension_numbers<[1], [0], [0], [1], [0, 0, 1, 1], [], []>} : vector<8x128xf32>, vector<128x384xf32>, vector<8x384xf32> -> vector<8x384xf32>
    %348 = vector.extract_strided_slice %345 {offsets = [0, 0], sizes = [8, 128], strides = [1, 1]} : vector<8x384xf32> to vector<8x128xf32>
    %349 = vector.extract_strided_slice %347 {offsets = [0, 0], sizes = [8, 128], strides = [1, 1]} : vector<8x384xf32> to vector<8x128xf32>
    %350 = arith.addf %348, %349 : vector<8x128xf32>
    %351 = arith.negf %350 : vector<8x128xf32>
    %352 = math.exp %351 : vector<8x128xf32>
    %cst_116 = arith.constant 1.000000e+00 : f32
    %353 = vector.broadcast %cst_116 : f32 to vector<8x128xf32>
    %354 = arith.addf %353, %352 : vector<8x128xf32>
    %355 = arith.divf %353, %354 : vector<8x128xf32>
    %356 = vector.extract_strided_slice %345 {offsets = [0, 128], sizes = [8, 128], strides = [1, 1]} : vector<8x384xf32> to vector<8x128xf32>
    %357 = vector.extract_strided_slice %347 {offsets = [0, 128], sizes = [8, 128], strides = [1, 1]} : vector<8x384xf32> to vector<8x128xf32>
    %358 = arith.addf %356, %357 : vector<8x128xf32>
    %359 = arith.negf %358 : vector<8x128xf32>
    %360 = math.exp %359 : vector<8x128xf32>
    %cst_117 = arith.constant 1.000000e+00 : f32
    %361 = vector.broadcast %cst_117 : f32 to vector<8x128xf32>
    %362 = arith.addf %361, %360 : vector<8x128xf32>
    %363 = arith.divf %361, %362 : vector<8x128xf32>
    %364 = vector.extract_strided_slice %345 {offsets = [0, 256], sizes = [8, 128], strides = [1, 1]} : vector<8x384xf32> to vector<8x128xf32>
    %365 = vector.extract_strided_slice %347 {offsets = [0, 256], sizes = [8, 128], strides = [1, 1]} : vector<8x384xf32> to vector<8x128xf32>
    %366 = vector.broadcast %4 : vector<1x128xf32> to vector<8x128xf32>
    %367 = arith.addf %365, %366 : vector<8x128xf32>
    %368 = arith.mulf %355, %367 : vector<8x128xf32>
    %369 = arith.addf %364, %368 : vector<8x128xf32>
    %370 = math.tanh %369 : vector<8x128xf32>
    %cst_118 = arith.constant 1.000000e+00 : f32
    %371 = vector.broadcast %cst_118 : f32 to vector<8x128xf32>
    %372 = arith.subf %371, %363 : vector<8x128xf32>
    %373 = arith.mulf %372, %370 : vector<8x128xf32>
    %374 = arith.mulf %363, %342 : vector<8x128xf32>
    %375 = arith.addf %373, %374 : vector<8x128xf32>
    %376 = arith.addi %5, %c7_i32 : i32
    %377 = vector.broadcast %376 : i32 to vector<8x1xi32>
    %378 = arith.cmpi slt, %377, %3 : vector<8x1xi32>
    %379 = vector.shape_cast %378 : vector<8x1xi1> to vector<8x1xi1>
    %380 = vector.broadcast %379 : vector<8x1xi1> to vector<8x128xi1>
    %381 = arith.select %380, %375, %342 : vector<8x128xi1>, vector<8x128xf32>
    %c0_119 = arith.constant 0 : index
    %c0_120 = arith.constant 0 : index
    %382 = vector.load %arg8[%c0_119, %c0_120] : memref<8x128xf32, #tpu.memory_space<vmem>>, vector<8x128xf32>
    tpu.vector_store %arg8[%c0_119, %c0_120], %381 {strides = array<i32>} : memref<8x128xf32, #tpu.memory_space<vmem>>, vector<8x128xf32>,
    %cst_121 = arith.constant 0.000000e+00 : f32
    %383 = vector.shape_cast %378 : vector<8x1xi1> to vector<8x1xi1>
    %384 = vector.broadcast %383 : vector<8x1xi1> to vector<8x128xi1>
    %385 = vector.broadcast %cst_121 : f32 to vector<8x128xf32>
    %386 = arith.select %384, %375, %385 : vector<8x128xi1>, vector<8x128xf32>
    %387 = vector.shape_cast %386 : vector<8x128xf32> to vector<1x8x128xf32>
    %388 = arith.index_cast %c7_i32 : i32 to index
    %c0_122 = arith.constant 0 : index
    %c0_123 = arith.constant 0 : index
    %389 = vector.load %arg6[%388, %c0_122, %c0_123] : memref<8x8x128xf32, #tpu.memory_space<vmem>>, vector<1x8x128xf32>
    tpu.vector_store %arg6[%388, %c0_122, %c0_123], %387 {strides = array<i32>} : memref<8x8x128xf32, #tpu.memory_space<vmem>>, vector<1x8x128xf32>,
    %c8_i32_124 = arith.constant 8 : i32
    %c0_i32_125 = arith.constant 0 : i32
    %390 = arith.cmpi eq, %arg1, %c0_i32_125 : i32
    %391 = arith.extui %390 : i1 to i32
    %c0_i32_126 = arith.constant 0 : i32
    %392 = arith.cmpi ne, %391, %c0_i32_126 : i32
    scf.if %392 {
      %c0_127 = arith.constant 0 : index
      %c0_128 = arith.constant 0 : index
      %393 = vector.load %arg8[%c0_127, %c0_128] : memref<8x128xf32, #tpu.memory_space<vmem>>, vector<8x128xf32>
      %c0_129 = arith.constant 0 : index
      %c0_130 = arith.constant 0 : index
      %394 = vector.load %arg7[%c0_129, %c0_130] : memref<8x128xf32, #tpu.memory_space<vmem>>, vector<8x128xf32>
      tpu.vector_store %arg7[%c0_129, %c0_130], %393 {strides = array<i32>} : memref<8x128xf32, #tpu.memory_space<vmem>>, vector<8x128xf32>,
    } else {
    }
    return
  }
  func.func @transform_0(%arg0: i32, %arg1: i32) -> (i32, i32) {
    %c0_i32 = arith.constant 0 : i32
    %c0_i32_0 = arith.constant 0 : i32
    return %arg0, %c0_i32 : i32, i32
  }
  func.func @transform_1(%arg0: i32, %arg1: i32) -> (i32, i32, i32) {
    %c0_i32 = arith.constant 0 : i32
    %c0_i32_0 = arith.constant 0 : i32
    return %arg1, %arg0, %c0_i32 : i32, i32, i32
  }
  func.func @transform_2(%arg0: i32, %arg1: i32) -> (i32, i32) {
    %c0_i32 = arith.constant 0 : i32
    %c0_i32_0 = arith.constant 0 : i32
    %c0_i32_1 = arith.constant 0 : i32
    return %c0_i32, %c0_i32_0 : i32, i32
  }
  func.func @transform_3(%arg0: i32, %arg1: i32) -> (i32, i32) {
    %c0_i32 = arith.constant 0 : i32
    %c0_i32_0 = arith.constant 0 : i32
    %c0_i32_1 = arith.constant 0 : i32
    return %c0_i32, %c0_i32_0 : i32, i32
  }
  func.func @transform_4(%arg0: i32, %arg1: i32) -> (i32, i32, i32) {
    %c0_i32 = arith.constant 0 : i32
    %c0_i32_0 = arith.constant 0 : i32
    return %arg1, %arg0, %c0_i32 : i32, i32, i32
  }
  func.func @transform_5(%arg0: i32, %arg1: i32) -> (i32, i32) {
    %c0_i32 = arith.constant 0 : i32
    %c0_i32_0 = arith.constant 0 : i32
    return %arg0, %c0_i32 : i32, i32
  }
}

</mosaic_0001>

<bundles_post_ra>
// kernel: tpu_custom_call.1
= control target key start
LH: loop header
LB: loop body
LE: loop exit
PB: predicated region body
PF: predicated region fallthrough
CT: control target
= control target key end

     0   :  { %11 = vsyncpa [#allocation4], 0  ;;  %s3654_s0 = inlined_call_operand.hbm [shape: s32[8,128], index: 0, kind: input, shape index: {}]   ;;  %s3655_s1 = inlined_call_operand.hbm [shape: f32[8,8,384], index: 1, kind: input, shape index: {}]   ;;  %s3656_s2 = inlined_call_operand.hbm [shape: f32[128,384], index: 2, kind: input, shape index: {}]   ;;  %s3657_s3 = inlined_call_operand.hbm [shape: f32[1,128], index: 3, kind: input, shape index: {}]   ;;  %s3658_s4 = inlined_call_operand.hbm [shape: f32[8,8,128], index: 4, kind: output, shape index: {0}]   ;;  %s3659_s5 = inlined_call_operand.hbm [shape: f32[8,128], index: 5, kind: output, shape index: {1}]  }
   0x1   :  { %12 = vsyncpa [#allocation7], 0 }
   0x2   :  { %13 = vsyncpa [#allocation10], 0 }
   0x3   :  { %14 = vsyncpa [#allocation5], 0 }
   0x4   :  { %15 = vsyncpa [#allocation13], 0  ;;  %s3083_s18 = smov [#allocation6]   ;;  %s2941_s22 = scalar_lea.hbm %s3655_s1, 3072 }
   0x5   :  { %s31_s19 = sshll.u32 %s3083_s18, 4  ;;  %p2942_p0 = scmp.ne.s32.totalorder %s3655_s1, %s2941_s22  ;;  %s32_s19 = int_to_ptr.vmem [resolvable:$true] %s31_s19 }
   0x6   :  { %p2945_p1 = scmp.lt.u32.totalorder %s2941_s22, %s3655_s1 }
   0x8   :  { %p2947_p2 = pnand %p2945_p1, %p2942_p0 }
   0xa   :  { %2950 = shalt.err (!%p2947_p2)
}
   0xb   :  { %s2951_s27 = scalar_lea.vmem %s32_s19, 3072  ;;  %p2956_p4 = scmp.lt.s32.totalorder %s32_s19, %s32_s19 }
   0xc   :  { %p2952_p3 = scmp.ne.s32.totalorder %s32_s19, %s2951_s27  ;;  %p2957_p5 = scmp.lt.s32.totalorder %s2951_s27, %s2951_s27 }
   0xe   :  { %p2958_p6 = por %p2957_p5, %p2956_p4 }
  0x10   :  { %p2959_p7 = pnand %p2958_p6, %p2952_p3 }
  0x12   :  { %2962 = shalt.err (!%p2959_p7)
}
  0x13   :  { %s3084_s28 = smov 384   ;;  %s3085_s29 = smov 24  }
  0x14   :  { %37 = dma.hbm_to_vmem [thread:$0]  %s3655_s1, 3072, %s32_s19, [#allocation7], %s3084_s28, %s3084_s28, %s3085_s29  }
  0x15   :  { %s3086_s7 = smov [#allocation3]   ;;  %s3087_s9 = smov [#allocation8]  }
  0x16   :  { %s22_s8 = sshll.u32 %s3086_s7, 4  ;;  %s43_s10 = sshll.u32 %s3087_s9, 4  ;;  %s23_s8 = int_to_ptr.vmem [resolvable:$true] %s22_s8  ;;  %s44_s10 = int_to_ptr.vmem [resolvable:$true] %s43_s10 }
  0x17   :  { %s2963_s13 = scalar_lea.hbm %s3654_s0, 128 }
  0x18   :  { %p2964_p8 = scmp.ne.s32.totalorder %s3654_s0, %s2963_s13  ;;  %p2967_p9 = scmp.lt.u32.totalorder %s2963_s13, %s3654_s0 }
  0x1a   :  { %p2969_p10 = pnand %p2967_p9, %p2964_p8 }
  0x1c   :  { %2972 = shalt.err (!%p2969_p10)
}
  0x1d   :  { %s2973_s1 = scalar_lea.vmem %s23_s8, 128  ;;  %p2978_p12 = scmp.lt.s32.totalorder %s23_s8, %s23_s8 }
  0x1e   :  { %p2974_p11 = scmp.ne.s32.totalorder %s23_s8, %s2973_s1  ;;  %p2979_p13 = scmp.lt.s32.totalorder %s2973_s1, %s2973_s1 }
  0x20   :  { %p2980_p0 = por %p2979_p13, %p2978_p12 }
  0x22   :  { %p2981_p1 = pnand %p2980_p0, %p2974_p11 }
  0x24   :  { %2984 = shalt.err (!%p2981_p1)
}
  0x25   :  { %25 = dma.hbm_to_vmem [thread:$0]  %s3654_s0, 128, %s23_s8, [#allocation4]  }
  0x26   :  { %s2985_s22 = scalar_lea.hbm %s3656_s2, 6144 }
  0x27   :  { %p2986_p2 = scmp.ne.s32.totalorder %s3656_s2, %s2985_s22  ;;  %p2989_p3 = scmp.lt.u32.totalorder %s2985_s22, %s3656_s2 }
  0x29   :  { %p2991_p4 = pnand %p2989_p3, %p2986_p2 }
  0x2b   :  { %2994 = shalt.err (!%p2991_p4)
}
  0x2c   :  { %s2995_s27 = scalar_lea.vmem %s44_s10, 6144  ;;  %p3000_p6 = scmp.lt.s32.totalorder %s44_s10, %s44_s10 }
  0x2d   :  { %p2996_p5 = scmp.ne.s32.totalorder %s44_s10, %s2995_s27  ;;  %p3001_p7 = scmp.lt.s32.totalorder %s2995_s27, %s2995_s27 }
  0x2f   :  { %p3002_p8 = por %p3001_p7, %p3000_p6 }
  0x31   :  { %p3003_p9 = pnand %p3002_p8, %p2996_p5 }
  0x33   :  { %3006 = shalt.err (!%p3003_p9)
}
  0x34   :  { %49 = dma.hbm_to_vmem [thread:$0]  %s3656_s2, 6144, %s44_s10, [#allocation7], %s3084_s28, %s3084_s28, %s3085_s29  }
  0x35   :  { %s3088_s6 = smov [#allocation9]   ;;  %s3007_s11 = scalar_lea.hbm %s3657_s3, 16 }
  0x36   :  { %s56_s7 = sshll.u32 %s3088_s6, 4  ;;  %p3008_p10 = scmp.ne.s32.totalorder %s3657_s3, %s3007_s11  ;;  %s57_s7 = int_to_ptr.vmem [resolvable:$true] %s56_s7 }
  0x37   :  { %p3011_p11 = scmp.lt.u32.totalorder %s3007_s11, %s3657_s3 }
  0x39   :  { %p3013_p12 = pnand %p3011_p11, %p3008_p10 }
  0x3b   :  { %3016 = shalt.err (!%p3013_p12)
}
  0x3c   :  { %s3017_s16 = scalar_lea.vmem %s57_s7, 16  ;;  %s3021_s2 = scalar_lea.vmem %s57_s7, 32 }
  0x3d   :  { %p3018_p13 = scmp.ne.s32.totalorder %s57_s7, %s3017_s16  ;;  %p3022_p0 = scmp.lt.s32.totalorder %s57_s7, %s57_s7 }
  0x3e   :  { %p3023_p1 = scmp.lt.s32.totalorder %s3021_s2, %s3017_s16 }
  0x40   :  { %p3024_p2 = por %p3023_p1, %p3022_p0 }
  0x42   :  { %p3025_p3 = pnand %p3024_p2, %p3018_p13 }
  0x44   :  { %3028 = shalt.err (!%p3025_p3)
}
  0x45   :  { %59 = dma.hbm_to_vmem [thread:$0]  %s3657_s3, 16, %s57_s7, [#allocation10]  }
  0x46   :  { %3073 = dma.done.wait [#allocation4], 128  }
  0x47   :  { %3074 = vsyncadd [#allocation4], 4294967168 }
  0x48   :  { %3075 = dma.done.wait [#allocation7], 9216  }
  0x49   :  { %3076 = vsyncadd [#allocation7], 4294958080 }
  0x4a   :  { %3077 = dma.done.wait [#allocation10], 16  }
  0x4b   :  { %3078 = vsyncadd [#allocation10], 4294967280  ;;  %v3089_v0 = vmov 0.0|0.0   ;;  %v3090_v1 = vmov 0.0   ;;  %vm3091_vm0 = vmmov 0   ;;  %v3092_v2 = vmov 0  }
  0x4c   :  { %2428 = vmatprep.subr.bf16.mxu1 %v3089_v0  ;;  %196 = vmatprep.mubr.f32.mxu0 %v3090_v1  ;;  %v85_v3 = vld [vmem:[#allocation8 + $0x8] sm:$0xff]  ;;  %v88_v4 = vld [vmem:[#allocation8 + $0x20] sm:$0xff]  ;;  %v87_v7 = vld [vmem:[#allocation8 + $0x18] sm:$0xff]  ;;  %s3093_s3 = smov [#allocation11]   ;;  %s3094_s17 = smov [#allocation12]  }
  0x4d   :  { %2148 = vmatprep.mubr.msk.f32.mxu1 %vm3091_vm0, %v3090_v1  ;;  %2858 = vset.pattern.permute.xlu0 %v3092_v2  ;;  %v84_v5 = vld [vmem:[#allocation8] sm:$0xff]  ;;  %v3187_v6 = vpack.c.bf16 %v88_v4, %v85_v3  ;;  %v91_v8 = vld [vmem:[#allocation8 + $0x38] sm:$0xff]  ;;  %v94_v9 = vld [vmem:[#allocation8 + $0x50] sm:$0xff]  ;;  %s1925_s10 = sshll.u32 %s3093_s3, 4  ;;  %s1938_s1 = sshll.u32 %s3094_s17, 4  ;;  %s1926_s10 = int_to_ptr.vmem [resolvable:$true] %s1925_s10  ;;  %s3623_s1 = int_to_ptr.vmem [resolvable:$true] %s1938_s1 }
  0x4e   :  { %2859 = vset.pattern.permute.xlu1 %v3092_v2  ;;  %v3189_v10 = vpack.c.bf16 %v87_v7, %v84_v5  ;;  %v3191_v11 = vpack.c.bf16 %v94_v9, %v91_v8  ;;  %v90_v12 = vld [vmem:[#allocation8 + $0x30] sm:$0xff]  ;;  %v93_v13 = vld [vmem:[#allocation8 + $0x48] sm:$0xff]  ;;  %v100_v15 = vld [vmem:[#allocation8 + $0x80] sm:$0xff]  ;;  %s3029_s18 = scalar_lea.vmem %s1926_s10, 1024  ;;  %p3034_p5 = scmp.lt.s32.totalorder %s1926_s10, %s1926_s10 }
  0x4f   :  { %v97_v14 = vld [vmem:[#allocation8 + $0x68] sm:$0xff]  ;;  %2397 = vmatprep.subr.bf16.mxu0 %v3187_v6  ;;  %v3195_v16 = vpack.c.bf16 %v93_v13, %v90_v12  ;;  %v96_v18 = vld [vmem:[#allocation8 + $0x60] sm:$0xff]  ;;  %v99_v19 = vld [vmem:[#allocation8 + $0x78] sm:$0xff]  ;;  %p3030_p4 = scmp.ne.s32.totalorder %s1926_s10, %s3029_s18  ;;  %p3035_p6 = scmp.lt.s32.totalorder %s3029_s18, %s3029_s18 }
  0x50   :  { %2399 = vmatpush1.bf16.msra.mxu0 %v3189_v10  ;;  %v3198_v17 = vpack.c.bf16 %v100_v15, %v97_v14  ;;  %v103_v20 = vld [vmem:[#allocation8 + $0x98] sm:$0xff]  ;;  %v106_v21 = vld [vmem:[#allocation8 + $0xb0] sm:$0xff]  ;;  %v3201_v22 = vpack.c.bf16 %v99_v19, %v96_v18  ;;  %v105_v25 = vld [vmem:[#allocation8 + $0xa8] sm:$0xff] }
  0x51   :  { %2401 = vmatprep.subr.bf16.mxu0 %v3191_v11  ;;  %v102_v23 = vld [vmem:[#allocation8 + $0x90] sm:$0xff]  ;;  %v3204_v24 = vpack.c.bf16 %v106_v21, %v103_v20  ;;  %v89_v27 = vld [vmem:[#allocation8 + $0x28] sm:$0xff]  ;;  %v112_v29 = vld [vmem:[#allocation8 + $0xe0] sm:$0xff]  ;;  %p3036_p7 = por %p3035_p6, %p3034_p5 }
  0x52   :  { %v86_v26 = vld [vmem:[#allocation8 + $0x10] sm:$0xff]  ;;  %v109_v28 = vld [vmem:[#allocation8 + $0xc8] sm:$0xff]  ;;  %v92_v31 = vld [vmem:[#allocation8 + $0x40] sm:$0xff]  ;;  %v3209_v33 = vpack.c.bf16 %v105_v25, %v102_v23 }
  0x53   :  { %v3206_v30 = vpack.c.bf16 %v89_v27, %v86_v26  ;;  %v95_v32 = vld [vmem:[#allocation8 + $0x58] sm:$0xff]  ;;  %v108_v34 = vld [vmem:[#allocation8 + $0xc0] sm:$0xff]  ;;  %v3215_v36 = vpack.c.bf16 %v112_v29, %v109_v28  ;;  %v98_v38 = vld [vmem:[#allocation8 + $0x70] sm:$0xff]  ;;  %p3037_p8 = pnand %p3036_p7, %p3030_p4 }
  0x54   :  { %2403 = vmatpush1.bf16.msra.mxu0 %v3195_v16  ;;  %v3212_v35 = vpack.c.bf16 %v95_v32, %v92_v31  ;;  %v111_v37 = vld [vmem:[#allocation8 + $0xd8] sm:$0xff]  ;;  %v101_v39 = vld [vmem:[#allocation8 + $0x88] sm:$0xff]  ;;  %v118_v41 = vld [vmem:[#allocation8 + $0x110] sm:$0xff] }
  0x55   :  { %2405 = vmatprep.subr.bf16.mxu0 %v3198_v17  ;;  %2430 = vmatpush3.bf16.msra.mxu1 %v3206_v30  ;;  %v115_v40 = vld [vmem:[#allocation8 + $0xf8] sm:$0xff]  ;;  %v3219_v42 = vpack.c.bf16 %v111_v37, %v108_v34  ;;  %v114_v43 = vld [vmem:[#allocation8 + $0xf0] sm:$0xff]  ;;  %v3222_v44 = vpack.c.bf16 %v101_v39, %v98_v38  ;;  %v117_v47 = vld [vmem:[#allocation8 + $0x108] sm:$0xff] }
  0x56   :  { %2431 = vmatprep.subr.bf16.mxu1 %v3089_v0  ;;  %v3224_v45 = vld [vmem:[#allocation3] sm:$0xff]  ;;  %v3227_v46 = vpack.c.bf16 %v118_v41, %v115_v40  ;;  %v104_v48 = vld [vmem:[#allocation8 + $0xa0] sm:$0xff]  ;;  %v121_v50 = vld [vmem:[#allocation8 + $0x128] sm:$0xff]  ;;  %v3234_v53 = vpack.c.bf16 %v117_v47, %v114_v43 }
  0x57   :  { %v107_v49 = vld [vmem:[#allocation8 + $0xb8] sm:$0xff]  ;;  %vm1956_vm1 = vcmp.gt.s32.totalorder %v3224_v45, 0  ;;  %vm1959_vm2 = vcmp.gt.s32.totalorder %v3224_v45, 1  ;;  %v124_v51 = vld [vmem:[#allocation8 + $0x140] sm:$0xff]  ;;  %v110_v59 = vld [vmem:[#allocation8 + $0xd0] sm:$0xff]  ;;  %vm1968_vm3 = vcmp.gt.s32.totalorder %v3224_v45, 4 }
  0x58   :  { %2407 = vmatpush1.bf16.msra.mxu0 %v3201_v22  ;;  %v303_v52 = vsel %vm1956_vm1, 1, %v3092_v2  ;;  %v120_v54 = vld [vmem:[#allocation8 + $0x120] sm:$0xff]  ;;  %v3237_v55 = vpack.c.bf16 %v107_v49, %v104_v48  ;;  %v531_v56 = vsel %vm1959_vm2, 1, %v3092_v2  ;;  %v3241_v57 = vpack.c.bf16 %v124_v51, %v121_v50  ;;  %v123_v58 = vld [vmem:[#allocation8 + $0x138] sm:$0xff]  ;;  %v113_v60 = vld [vmem:[#allocation8 + $0xe8] sm:$0xff] }
  0x59   :  { %2409 = vmatprep.subr.bf16.mxu0 %v3204_v24  ;;  %2433 = vmatpush3.bf16.msra.mxu1 %v3212_v35  ;;  %v127_v61 = vld [vmem:[#allocation8 + $0x158] sm:$0xff]  ;;  %v130_v62 = vld [vmem:[#allocation8 + $0x170] sm:$0xff]  ;;  %v3246_v63 = vpack.c.bf16 %v123_v58, %v120_v54  ;;  %v3249_v4 = vpack.c.bf16 %v113_v60, %v110_v59  ;;  %v1218_v5 = vsel %vm1968_vm3, 1, %v3092_v2  ;;  %v129_v8 = vld [vmem:[#allocation8 + $0x168] sm:$0xff]  ;;  %vm1974_vm4 = vcmp.gt.s32.totalorder %v3224_v45, 6 }
  0x5a   :  { %2434 = vmatprep.subr.bf16.mxu1 %v3089_v0  ;;  %305 = vperm.xlu0 %2858, %v303_v52   ;;  %v126_v3 = vld [vmem:[#allocation8 + $0x150] sm:$0xff]  ;;  %v3253_v7 = vpack.c.bf16 %v130_v62, %v127_v61  ;;  %v116_v9 = vld [vmem:[#allocation8 + $0x100] sm:$0xff]  ;;  %v119_v12 = vld [vmem:[#allocation8 + $0x118] sm:$0xff]  ;;  %v1676_v15 = vsel %vm1974_vm4, 1, %v3092_v2  ;;  %vm1962_vm6 = vcmp.gt.s32.totalorder %v3224_v45, 2  ;;  %vm1965_vm7 = vcmp.gt.s32.totalorder %v3224_v45, 3 }
  0x5b   :  { %v3258_v13 = vpack.c.bf16 %v129_v8, %v126_v3  ;;  %v3261_v14 = vpack.c.bf16 %v119_v12, %v116_v9  ;;  %v122_v18 = vld [vmem:[#allocation8 + $0x130] sm:$0xff]  ;;  %v125_v19 = vld [vmem:[#allocation8 + $0x148] sm:$0xff]  ;;  %v128_v21 = vld [vmem:[#allocation8 + $0x160] sm:$0xff]  ;;  %v760_v8 = vsel %vm1962_vm6, 1, %v3092_v2  ;;  %v989_v9 = vsel %vm1965_vm7, 1, %v3092_v2 }
  0x5c   :  { %2411 = vmatpush1.bf16.msra.mxu0 %v3209_v33  ;;  %v3268_v20 = vpack.c.bf16 %v125_v19, %v122_v18  ;;  %v131_v23 = vld [vmem:[#allocation8 + $0x178] sm:$0xff]  ;;  %v81_v26 = vld [vmem:[#allocation6] sm:$0xff]  ;;  %v82_v29 = vld [vmem:[#allocation6 + $0x8] sm:$0xff]  ;;  %762 = vperm.xlu1 %2859, %v760_v8   ;;  %vm1971_vm8 = vcmp.gt.s32.totalorder %v3224_v45, 5  ;;  %vm1977_vm9 = vcmp.gt.s32.totalorder %v3224_v45, 7 }
  0x5d   :  { %2413 = vmatprep.subr.bf16.mxu0 %v3215_v36  ;;  %2436 = vmatpush3.bf16.msra.mxu1 %v3222_v44  ;;  %v3274_v25 = vpack.c.bf16 %v131_v23, %v128_v21  ;;  %v3315_v47 = vld [vmem:[#allocation9] ss:$0 sm:$0xff]  ;;  %v83_v51 = vld [vmem:[#allocation6 + $0x10] sm:$0xff]  ;;  %v1447_v12 = vsel %vm1971_vm8, 1, %v3092_v2 }
  0x5e   :  { %2437 = vmatprep.subr.bf16.mxu1 %v3089_v0  ;;  %533 = vperm.xlu0 %2858, %v531_v56   ;;  %v315_v23 = vld [vmem:[#allocation6 + $0x20] sm:$0xff] }
  0x5f   :  { %v1008_v8 = vld [vmem:[#allocation8 + $0x20] sm:$0xff] }
  0x60   :  { %2415 = vmatpush1.bf16.msra.mxu0 %v3219_v42  ;;  %991 = vperm.xlu1 %2859, %v989_v9  }
  0x61   :  { %2417 = vmatprep.subr.bf16.mxu0 %v3227_v46  ;;  %2439 = vmatpush3.bf16.msra.mxu1 %v3237_v55 }
  0x62   :  { %2440 = vmatprep.subr.bf16.mxu1 %v3089_v0  ;;  %1220 = vperm.xlu0 %2858, %v1218_v5  }
  0x64   :  { %2419 = vmatpush1.bf16.msra.mxu0 %v3234_v53  ;;  %1449 = vperm.xlu1 %2859, %v1447_v12   ;;  %v1004_v12 = vld [vmem:[#allocation8] sm:$0xff] }
  0x65   :  { %2421 = vmatprep.subr.bf16.mxu0 %v3241_v57  ;;  %2442 = vmatpush3.bf16.msra.mxu1 %v3249_v4 }
  0x66   :  { %2443 = vmatprep.subr.bf16.mxu1 %v3089_v0  ;;  %1678 = vperm.xlu0 %2858, %v1676_v15   ;;  %v314_v15 = vld [vmem:[#allocation6 + $0x18] sm:$0xff] }
  0x68   :  { %2423 = vmatpush1.bf16.msra.mxu0 %v3246_v63 }
  0x69   :  { %2425 = vmatprep.subr.bf16.mxu0 %v3253_v7  ;;  %2445 = vmatpush3.bf16.msra.mxu1 %v3261_v14 }
  0x6a   :  { %2446 = vmatprep.subr.bf16.mxu1 %v3089_v0 }
  0x6c   :  { %2427 = vmatpush1.bf16.msra.mxu0 %v3258_v13 }
  0x6d   :  { %2453 = vmatprep.subr.bf16.mxu0 %v3187_v6  ;;  %2448 = vmatpush3.bf16.msra.mxu1 %v3268_v20 }
  0x6e   :  { %2449 = vmatprep.subr.bf16.mxu1 %v3089_v0 }
  0x6f   :  { %197 = vmatmul.mubr.f32.vlgmr.msra.gmra.mrb[0].mxu0 %v3090_v1 }
  0x70   :  { %2455 = vmatpush1.bf16.msra.mxu0 %v3189_v10  ;;  %429 = vmatprep.mubr.f32.mxu0 %v3090_v1 }
  0x71   :  { %2457 = vmatprep.subr.bf16.mxu0 %v3191_v11  ;;  %2451 = vmatpush3.bf16.msra.mxu1 %v3274_v25 }
  0x72   :  { %2484 = vmatprep.subr.bf16.mxu1 %v3089_v0 }
  0x74   :  { %2459 = vmatpush1.bf16.msra.mxu0 %v3195_v16  ;;  %2149 = vmatmul.mubr.f32.vlgmr.msra.gmra.mrb[0].mxu1 %v3090_v1 }
  0x75   :  { %2461 = vmatprep.subr.bf16.mxu0 %v3198_v17  ;;  %2486 = vmatpush3.bf16.msra.mxu1 %v3206_v30 }
  0x76   :  { %2487 = vmatprep.subr.bf16.mxu1 %v3089_v0  ;;  %2183 = vmatprep.mubr.msk.f32.mxu1 %vm3091_vm0, %v3090_v1 }
  0x78   :  { %2463 = vmatpush1.bf16.msra.mxu0 %v3201_v22 }
  0x79   :  { %2465 = vmatprep.subr.bf16.mxu0 %v3204_v24  ;;  %2489 = vmatpush3.bf16.msra.mxu1 %v3212_v35 }
  0x7a   :  { %2490 = vmatprep.subr.bf16.mxu1 %v3089_v0 }
  0x7c   :  { %2467 = vmatpush1.bf16.msra.mxu0 %v3209_v33 }
  0x7d   :  { %2469 = vmatprep.subr.bf16.mxu0 %v3215_v36  ;;  %2492 = vmatpush3.bf16.msra.mxu1 %v3222_v44 }
  0x7e   :  { %2493 = vmatprep.subr.bf16.mxu1 %v3089_v0 }
  0x80   :  { %2471 = vmatpush1.bf16.msra.mxu0 %v3219_v42 }
  0x81   :  { %2473 = vmatprep.subr.bf16.mxu0 %v3227_v46  ;;  %2495 = vmatpush3.bf16.msra.mxu1 %v3237_v55 }
  0x82   :  { %2496 = vmatprep.subr.bf16.mxu1 %v3089_v0 }
  0x84   :  { %2475 = vmatpush1.bf16.msra.mxu0 %v3234_v53 }
  0x85   :  { %2477 = vmatprep.subr.bf16.mxu0 %v3241_v57  ;;  %2498 = vmatpush3.bf16.msra.mxu1 %v3249_v4 }
  0x86   :  { %2499 = vmatprep.subr.bf16.mxu1 %v3089_v0 }
  0x88   :  { %2479 = vmatpush1.bf16.msra.mxu0 %v3246_v63 }
  0x89   :  { %2481 = vmatprep.subr.bf16.mxu0 %v3253_v7  ;;  %2501 = vmatpush3.bf16.msra.mxu1 %v3261_v14 }
  0x8a   :  { %2502 = vmatprep.subr.bf16.mxu1 %v3089_v0 }
  0x8c   :  { %2483 = vmatpush1.bf16.msra.mxu0 %v3258_v13 }
  0x8d   :  { %2509 = vmatprep.subr.bf16.mxu0 %v3187_v6  ;;  %2504 = vmatpush3.bf16.msra.mxu1 %v3268_v20 }
  0x8e   :  { %2505 = vmatprep.subr.bf16.mxu1 %v3089_v0 }
  0x91   :  { %2507 = vmatpush3.bf16.msra.mxu1 %v3274_v25 }
  0x92   :  { %2540 = vmatprep.subr.bf16.mxu1 %v3089_v0 }
  0xd9   :  { %v306_v62 = vpop.permute.xlu0 %305 }
  0xda   :  { %vm307_vm5 = vcmp.eq.s32.totalorder %v306_v62, 1 }
 0x142   :  { %v198_v27 = vpop.f32.mrb[0].mxu0 }
 0x143   :  { %v273_v28 = vadd.f32 %v198_v27, %v81_v26  ;;  %v200_v31 = vpop.f32.mrb[1].mxu0 }
 0x144   :  { %v280_v34 = vadd.f32 %v200_v31, %v82_v29 }
 0x145   :  { %v1953_v32 = vmul.f32 -1.442695, %v273_v28 }
 0x146   :  { %v1954_v37 = vmul.f32 -1.442695, %v280_v34 }
 0x147   :  { %2860 = vpow2.f32 %v1953_v32  ;;  %v269_v38 = vpop.f32.mrb[0].mxu1 }
 0x148   :  { %v2150_v39 = vpop.f32.mrb[1].mxu1  ;;  %2862 = vpow2.f32 %v1954_v37  ;;  %v293_v49 = vadd.f32 %v3315_v47, %v269_v38 }
 0x149   :  { %v316_v39 = vld [vmem:[#allocation6 + $0x28] sm:$0xff] }
 0x151   :  { %v2861_v40 = vpop.eup %2860 }
 0x152   :  { %v277_v41 = vadd.f32 1.0, %v2861_v40  ;;  %v2863_v43 = vpop.eup %2862 }
 0x153   :  { %v284_v48 = vadd.f32 1.0, %v2863_v43 }
 0x154   :  { %2864 = vrcp.f32 %v277_v41 }
 0x155   :  { %2866 = vrcp.f32 %v284_v48 }
 0x15e   :  { %v2865_v50 = vpop.eup %2864 }
 0x15f   :  { %v294_v52 = vmul.f32 %v2865_v50, %v293_v49  ;;  %v2867_v56 = vpop.eup %2866 }
 0x160   :  { %v297_v58 = vsub.f32 1.0, %v2867_v56  ;;  %v299_v61 = vmul.f32 0.0, %v2867_v56 }
 0x161   :  { %v295_v54 = vadd.f32 %v294_v52, %v83_v51  ;;  %v534_v52 = vpop.permute.xlu0 %533 }
 0x162   :  { %vm535_vm10 = vcmp.eq.s32.totalorder %v534_v52, 1 }
 0x163   :  { %2868 = vtanh.f32 %v295_v54 }
 0x16d   :  { %v2869_v59 = vpop.eup %2868 }
 0x16e   :  { %v298_v60 = vmul.f32 %v2869_v59, %v297_v58 }
 0x170   :  { %v300_v3 = vadd.f32 %v299_v61, %v298_v60 }
 0x172   :  { %v3318_v5 = vsel %vm307_vm5, %v300_v3, 0.0  ;;  %1978 = vmatmul.mubr.msk.f32.vlgmr.msra.gmra.mrb[2].mxu0 %vm307_vm5, %v300_v3  ;;  %2184 = vmatmul.mubr.msk.f32.vlgmr.msra.gmra.mrb[2].mxu1 %vm307_vm5, %v300_v3 }
 0x173   :  { %311 = vst [vmem:[#allocation11] sm:$0xff] %v3318_v5  ;;  %2511 = vmatpush1.bf16.msra.mxu0 %v3189_v10  ;;  %2542 = vmatpush3.bf16.msra.mxu1 %v3206_v30 }
 0x174   :  { %2513 = vmatprep.subr.bf16.mxu0 %v3191_v11  ;;  %2543 = vmatprep.subr.bf16.mxu1 %v3089_v0 }
 0x175   :  { %658 = vmatprep.mubr.f32.mxu0 %v3090_v1  ;;  %2218 = vmatprep.mubr.msk.f32.mxu1 %vm3091_vm0, %v3090_v1 }
 0x177   :  { %2515 = vmatpush1.bf16.msra.mxu0 %v3195_v16  ;;  %2545 = vmatpush3.bf16.msra.mxu1 %v3212_v35 }
 0x178   :  { %2517 = vmatprep.subr.bf16.mxu0 %v3198_v17  ;;  %2546 = vmatprep.subr.bf16.mxu1 %v3089_v0 }
 0x17b   :  { %2519 = vmatpush1.bf16.msra.mxu0 %v3201_v22  ;;  %2548 = vmatpush3.bf16.msra.mxu1 %v3222_v44 }
 0x17c   :  { %2521 = vmatprep.subr.bf16.mxu0 %v3204_v24  ;;  %2549 = vmatprep.subr.bf16.mxu1 %v3089_v0 }
 0x17f   :  { %2523 = vmatpush1.bf16.msra.mxu0 %v3209_v33  ;;  %2551 = vmatpush3.bf16.msra.mxu1 %v3237_v55 }
 0x180   :  { %2525 = vmatprep.subr.bf16.mxu0 %v3215_v36  ;;  %2552 = vmatprep.subr.bf16.mxu1 %v3089_v0 }
 0x183   :  { %2527 = vmatpush1.bf16.msra.mxu0 %v3219_v42  ;;  %2554 = vmatpush3.bf16.msra.mxu1 %v3249_v4 }
 0x184   :  { %2529 = vmatprep.subr.bf16.mxu0 %v3227_v46  ;;  %2555 = vmatprep.subr.bf16.mxu1 %v3089_v0 }
 0x187   :  { %2531 = vmatpush1.bf16.msra.mxu0 %v3234_v53  ;;  %2557 = vmatpush3.bf16.msra.mxu1 %v3261_v14 }
 0x188   :  { %2533 = vmatprep.subr.bf16.mxu0 %v3241_v57  ;;  %2558 = vmatprep.subr.bf16.mxu1 %v3089_v0 }
 0x18b   :  { %2535 = vmatpush1.bf16.msra.mxu0 %v3246_v63  ;;  %2560 = vmatpush3.bf16.msra.mxu1 %v3268_v20 }
 0x18c   :  { %2537 = vmatprep.subr.bf16.mxu0 %v3253_v7  ;;  %2561 = vmatprep.subr.bf16.mxu1 %v3089_v0 }
 0x18f   :  { %2539 = vmatpush1.bf16.msra.mxu0 %v3258_v13  ;;  %2563 = vmatpush3.bf16.msra.mxu1 %v3274_v25 }
 0x190   :  { %2565 = vmatprep.subr.bf16.mxu0 %v3187_v6  ;;  %2596 = vmatprep.subr.bf16.mxu1 %v3089_v0  ;;  %v1905_v6 = vsel %vm1977_vm9, 1, %v3092_v2 }
 0x191   :  { %1907 = vperm.xlu1 %2859, %v1905_v6   ;;  %v1007_v6 = vld [vmem:[#allocation8 + $0x18] sm:$0xff] }
 0x245   :  { %v431_v18 = vpop.f32.mrb[2].mxu0  ;;  %v502_v19 = vpop.f32.mrb[2].mxu1 }
 0x246   :  { %v506_v21 = vadd.f32 %v431_v18, %v314_v15  ;;  %v433_v26 = vpop.f32.mrb[3].mxu0  ;;  %v2185_v27 = vpop.f32.mrb[3].mxu1  ;;  %v520_v2 = vadd.f32 %v3315_v47, %v502_v19  ;;  %v1006_v15 = vld [vmem:[#allocation8 + $0x10] sm:$0xff]  ;;  %v3417_v18 = vpack.c.bf16 %v1007_v6, %v1004_v12  ;;  %v1009_v19 = vld [vmem:[#allocation8 + $0x28] sm:$0xff] }
 0x247   :  { %v513_v29 = vadd.f32 %v433_v26, %v315_v23  ;;  %v1011_v23 = vld [vmem:[#allocation8 + $0x38] sm:$0xff]  ;;  %v1014_v26 = vld [vmem:[#allocation8 + $0x50] sm:$0xff] }
 0x248   :  { %v1957_v28 = vmul.f32 -1.442695, %v506_v21  ;;  %v3420_v21 = vpack.c.bf16 %v1009_v19, %v1006_v15  ;;  %v3424_v27 = vpack.c.bf16 %v1014_v26, %v1011_v23  ;;  %v1050_v12 = vld [vmem:[#allocation8 + $0x170] sm:$0xff]  ;;  %v1049_v26 = vld [vmem:[#allocation8 + $0x168] sm:$0xff] }
 0x249   :  { %v1958_v31 = vmul.f32 -1.442695, %v513_v29  ;;  %v1013_v29 = vld [vmem:[#allocation8 + $0x48] sm:$0xff]  ;;  %v1046_v23 = vld [vmem:[#allocation8 + $0x150] sm:$0xff] }
 0x24a   :  { %2870 = vpow2.f32 %v1957_v28  ;;  %v1010_v28 = vld [vmem:[#allocation8 + $0x30] sm:$0xff] }
 0x24b   :  { %2872 = vpow2.f32 %v1958_v31  ;;  %v1012_v31 = vld [vmem:[#allocation8 + $0x40] sm:$0xff] }
 0x254   :  { %v2871_v32 = vpop.eup %2870 }
 0x255   :  { %v510_v34 = vadd.f32 1.0, %v2871_v32  ;;  %v2873_v45 = vpop.eup %2872  ;;  %v3427_v32 = vpack.c.bf16 %v1013_v29, %v1010_v28  ;;  %v1048_v28 = vld [vmem:[#allocation8 + $0x160] sm:$0xff]  ;;  %v1051_v29 = vld [vmem:[#allocation8 + $0x178] sm:$0xff] }
 0x256   :  { %v517_v37 = vadd.f32 1.0, %v2873_v45 }
 0x257   :  { %2874 = vrcp.f32 %v510_v34  ;;  %v1015_v34 = vld [vmem:[#allocation8 + $0x58] sm:$0xff] }
 0x258   :  { %2876 = vrcp.f32 %v517_v37  ;;  %v3430_v45 = vpack.c.bf16 %v1015_v34, %v1012_v31  ;;  %v1017_v37 = vld [vmem:[#allocation8 + $0x68] sm:$0xff]  ;;  %v3485_v31 = vpack.c.bf16 %v1049_v26, %v1046_v23  ;;  %v3489_v34 = vpack.c.bf16 %v1051_v29, %v1048_v28 }
 0x261   :  { %v2875_v38 = vpop.eup %2874 }
 0x262   :  { %v521_v40 = vmul.f32 %v2875_v38, %v520_v2  ;;  %v2877_v43 = vpop.eup %2876  ;;  %v1020_v2 = vld [vmem:[#allocation8 + $0x80] sm:$0xff] }
 0x263   :  { %v524_v48 = vsub.f32 1.0, %v2877_v43  ;;  %v526_v51 = vmul.f32 %v2877_v43, %v3318_v5  ;;  %v3434_v38 = vpack.c.bf16 %v1020_v2, %v1017_v37  ;;  %v772_v37 = vld [vmem:[#allocation6 + $0x48] sm:$0xff] }
 0x264   :  { %v522_v41 = vadd.f32 %v521_v40, %v316_v39  ;;  %v1016_v39 = vld [vmem:[#allocation8 + $0x60] sm:$0xff]  ;;  %v1019_v40 = vld [vmem:[#allocation8 + $0x78] sm:$0xff] }
 0x265   :  { %v3437_v43 = vpack.c.bf16 %v1019_v40, %v1016_v39 }
 0x266   :  { %2878 = vtanh.f32 %v522_v41  ;;  %v1018_v41 = vld [vmem:[#allocation8 + $0x70] sm:$0xff] }
 0x270   :  { %v2879_v49 = vpop.eup %2878 }
 0x271   :  { %v525_v50 = vmul.f32 %v2879_v49, %v524_v48  ;;  %v1021_v48 = vld [vmem:[#allocation8 + $0x88] sm:$0xff] }
 0x272   :  { %v3440_v49 = vpack.c.bf16 %v1021_v48, %v1018_v41  ;;  %v773_v41 = vld [vmem:[#allocation6 + $0x50] sm:$0xff] }
 0x273   :  { %v527_v54 = vadd.f32 %v526_v51, %v525_v50  ;;  %v1023_v50 = vld [vmem:[#allocation8 + $0x98] sm:$0xff]  ;;  %v1026_v51 = vld [vmem:[#allocation8 + $0xb0] sm:$0xff] }
 0x274   :  { %v3444_v52 = vpack.c.bf16 %v1026_v51, %v1023_v50 }
 0x275   :  { %v3367_v56 = vsel %vm535_vm10, %v527_v54, %v3318_v5  ;;  %v538_v58 = vsel %vm535_vm10, %v527_v54, 0.0  ;;  %v1005_v5 = vld [vmem:[#allocation8 + $0x8] sm:$0xff]  ;;  %v1022_v54 = vld [vmem:[#allocation8 + $0x90] sm:$0xff] }
 0x276   :  { %540 = vst [vmem:[#allocation11 + $0x8] sm:$0xff] %v538_v58  ;;  %659 = vmatmul.mubr.f32.vlgmr.msra.gmra.mrb[4].mxu0 %v3367_v56  ;;  %2219 = vmatmul.mubr.f32.vlgmr.msra.gmra.mrb[4].mxu1 %v3367_v56  ;;  %v3415_v9 = vpack.c.bf16 %v1008_v8, %v1005_v5  ;;  %v1024_v58 = vld [vmem:[#allocation8 + $0xa0] sm:$0xff]  ;;  %v1045_v5 = vld [vmem:[#allocation8 + $0x148] sm:$0xff]  ;;  %v1047_v8 = vld [vmem:[#allocation8 + $0x158] sm:$0xff] }
 0x277   :  { %2567 = vmatpush1.bf16.msra.mxu0 %v3189_v10  ;;  %2598 = vmatpush3.bf16.msra.mxu1 %v3206_v30  ;;  %v543_v10 = vld [vmem:[#allocation6 + $0x30] sm:$0xff]  ;;  %v3481_v19 = vpack.c.bf16 %v1050_v12, %v1047_v8  ;;  %v1002_v12 = vld [vmem:[#allocation6 + $0x68] sm:$0xff] }
 0x278   :  { %2569 = vmatprep.subr.bf16.mxu0 %v3191_v11  ;;  %2599 = vmatprep.subr.bf16.mxu1 %v3089_v0 }
 0x279   :  { %887 = vmatprep.mubr.f32.mxu0 %v3090_v1  ;;  %2253 = vmatprep.mubr.msk.f32.mxu1 %vm3091_vm0, %v3090_v1 }
 0x27b   :  { %2571 = vmatpush1.bf16.msra.mxu0 %v3195_v16  ;;  %2601 = vmatpush3.bf16.msra.mxu1 %v3212_v35 }
 0x27c   :  { %2573 = vmatprep.subr.bf16.mxu0 %v3198_v17  ;;  %2602 = vmatprep.subr.bf16.mxu1 %v3089_v0 }
 0x27f   :  { %2575 = vmatpush1.bf16.msra.mxu0 %v3201_v22  ;;  %2604 = vmatpush3.bf16.msra.mxu1 %v3222_v44  ;;  %v544_v22 = vld [vmem:[#allocation6 + $0x38] sm:$0xff] }
 0x280   :  { %2577 = vmatprep.subr.bf16.mxu0 %v3204_v24  ;;  %2605 = vmatprep.subr.bf16.mxu1 %v3089_v0 }
 0x283   :  { %2579 = vmatpush1.bf16.msra.mxu0 %v3209_v33  ;;  %2607 = vmatpush3.bf16.msra.mxu1 %v3237_v55 }
 0x284   :  { %2581 = vmatprep.subr.bf16.mxu0 %v3215_v36  ;;  %2608 = vmatprep.subr.bf16.mxu1 %v3089_v0 }
 0x287   :  { %2583 = vmatpush1.bf16.msra.mxu0 %v3219_v42  ;;  %2610 = vmatpush3.bf16.msra.mxu1 %v3249_v4 }
 0x288   :  { %2585 = vmatprep.subr.bf16.mxu0 %v3227_v46  ;;  %2611 = vmatprep.subr.bf16.mxu1 %v3089_v0 }
 0x28b   :  { %2587 = vmatpush1.bf16.msra.mxu0 %v3234_v53  ;;  %2613 = vmatpush3.bf16.msra.mxu1 %v3261_v14 }
 0x28c   :  { %2589 = vmatprep.subr.bf16.mxu0 %v3241_v57  ;;  %2614 = vmatprep.subr.bf16.mxu1 %v3089_v0 }
 0x28f   :  { %2591 = vmatpush1.bf16.msra.mxu0 %v3246_v63  ;;  %2616 = vmatpush3.bf16.msra.mxu1 %v3268_v20  ;;  %v545_v63 = vld [vmem:[#allocation6 + $0x40] sm:$0xff] }
 0x290   :  { %2593 = vmatprep.subr.bf16.mxu0 %v3253_v7  ;;  %2617 = vmatprep.subr.bf16.mxu1 %v3089_v0 }
 0x293   :  { %2595 = vmatpush1.bf16.msra.mxu0 %v3258_v13  ;;  %2619 = vmatpush3.bf16.msra.mxu1 %v3274_v25  ;;  %v763_v25 = vpop.permute.xlu1 %762 }
 0x294   :  { %2652 = vmatprep.subr.bf16.mxu1 %v3089_v0  ;;  %vm764_vm11 = vcmp.eq.s32.totalorder %v763_v25, 1  ;;  %2621 = vmatprep.subr.bf16.mxu0 %v3415_v9  ;;  %v1044_v25 = vld [vmem:[#allocation8 + $0x140] sm:$0xff] }
 0x349   :  { %v660_v11 = vpop.f32.mrb[4].mxu0  ;;  %v731_v16 = vpop.f32.mrb[4].mxu1 }
 0x34a   :  { %v735_v17 = vadd.f32 %v660_v11, %v543_v10  ;;  %v662_v24 = vpop.f32.mrb[5].mxu0  ;;  %v2220_v30 = vpop.f32.mrb[5].mxu1  ;;  %v749_v55 = vadd.f32 %v3315_v47, %v731_v16  ;;  %v1027_v11 = vld [vmem:[#allocation8 + $0xb8] sm:$0xff] }
 0x34b   :  { %v742_v35 = vadd.f32 %v662_v24, %v544_v22  ;;  %v3450_v16 = vpack.c.bf16 %v1027_v11, %v1024_v58  ;;  %v1032_v22 = vld [vmem:[#allocation8 + $0xe0] sm:$0xff] }
 0x34c   :  { %v1960_v33 = vmul.f32 -1.442695, %v735_v17  ;;  %v1029_v17 = vld [vmem:[#allocation8 + $0xc8] sm:$0xff]  ;;  %v1028_v30 = vld [vmem:[#allocation8 + $0xc0] sm:$0xff] }
 0x34d   :  { %v1961_v36 = vmul.f32 -1.442695, %v742_v35  ;;  %v3454_v24 = vpack.c.bf16 %v1032_v22, %v1029_v17  ;;  %v1030_v35 = vld [vmem:[#allocation8 + $0xd0] sm:$0xff] }
 0x34e   :  { %2880 = vpow2.f32 %v1960_v33  ;;  %v1031_v33 = vld [vmem:[#allocation8 + $0xd8] sm:$0xff] }
 0x34f   :  { %2882 = vpow2.f32 %v1961_v36  ;;  %v3457_v36 = vpack.c.bf16 %v1031_v33, %v1028_v30 }
 0x358   :  { %v2881_v42 = vpop.eup %2880 }
 0x359   :  { %v739_v44 = vadd.f32 1.0, %v2881_v42  ;;  %v2883_v46 = vpop.eup %2882  ;;  %v1033_v42 = vld [vmem:[#allocation8 + $0xe8] sm:$0xff] }
 0x35a   :  { %v746_v53 = vadd.f32 1.0, %v2883_v46  ;;  %v1035_v46 = vld [vmem:[#allocation8 + $0xf8] sm:$0xff] }
 0x35b   :  { %2884 = vrcp.f32 %v739_v44  ;;  %v3460_v44 = vpack.c.bf16 %v1033_v42, %v1030_v35  ;;  %v774_v35 = vld [vmem:[#allocation6 + $0x58] sm:$0xff] }
 0x35c   :  { %2886 = vrcp.f32 %v746_v53  ;;  %v1038_v53 = vld [vmem:[#allocation8 + $0x110] sm:$0xff] }
 0x365   :  { %v2885_v57 = vpop.eup %2884 }
 0x366   :  { %v750_v4 = vmul.f32 %v2885_v57, %v749_v55  ;;  %v2887_v13 = vpop.eup %2886  ;;  %v1034_v55 = vld [vmem:[#allocation8 + $0xf0] sm:$0xff]  ;;  %v3463_v57 = vpack.c.bf16 %v1038_v53, %v1035_v46 }
 0x367   :  { %v753_v14 = vsub.f32 1.0, %v2887_v13  ;;  %v755_v60 = vmul.f32 %v2887_v13, %v3367_v56 }
 0x368   :  { %v751_v7 = vadd.f32 %v750_v4, %v545_v63  ;;  %v1037_v63 = vld [vmem:[#allocation8 + $0x108] sm:$0xff]  ;;  %v1036_v4 = vld [vmem:[#allocation8 + $0x100] sm:$0xff] }
 0x369   :  { %v3466_v13 = vpack.c.bf16 %v1037_v63, %v1034_v55 }
 0x36a   :  { %2888 = vtanh.f32 %v751_v7  ;;  %v1039_v7 = vld [vmem:[#allocation8 + $0x118] sm:$0xff] }
 0x374   :  { %v2889_v20 = vpop.eup %2888 }
 0x375   :  { %v754_v59 = vmul.f32 %v2889_v20, %v753_v14  ;;  %v3468_v14 = vpack.c.bf16 %v1039_v7, %v1036_v4  ;;  %v1041_v20 = vld [vmem:[#allocation8 + $0x128] sm:$0xff] }
 0x377   :  { %v756_v61 = vadd.f32 %v755_v60, %v754_v59  ;;  %v1040_v59 = vld [vmem:[#allocation8 + $0x120] sm:$0xff]  ;;  %v3472_v60 = vpack.c.bf16 %v1044_v25, %v1041_v20  ;;  %v992_v20 = vpop.permute.xlu1 %991 }
 0x378   :  { %vm993_vm12 = vcmp.eq.s32.totalorder %v992_v20, 1 }
 0x379   :  { %v3408_v62 = vsel %vm764_vm11, %v756_v61, %v3367_v56  ;;  %v767_v3 = vsel %vm764_vm11, %v756_v61, 0.0  ;;  %v1025_v56 = vld [vmem:[#allocation8 + $0xa8] sm:$0xff]  ;;  %v1043_v61 = vld [vmem:[#allocation8 + $0x138] sm:$0xff] }
 0x37a   :  { %769 = vst [vmem:[#allocation11 + $0x10] sm:$0xff] %v767_v3  ;;  %888 = vmatmul.mubr.f32.vlgmr.msra.gmra.mrb[6].mxu0 %v3408_v62  ;;  %2254 = vmatmul.mubr.f32.vlgmr.msra.gmra.mrb[6].mxu1 %v3408_v62  ;;  %v3447_v10 = vpack.c.bf16 %v1025_v56, %v1022_v54  ;;  %v1042_v3 = vld [vmem:[#allocation8 + $0x130] sm:$0xff]  ;;  %v3475_v6 = vpack.c.bf16 %v1043_v61, %v1040_v59 }
 0x37b   :  { %1116 = vmatprep.mubr.f32.mxu0 %v3090_v1  ;;  %2288 = vmatprep.mubr.msk.f32.mxu1 %vm3091_vm0, %v3090_v1  ;;  %v3479_v15 = vpack.c.bf16 %v1045_v5, %v1042_v3 }
 0x37c   :  { %2623 = vmatpush1.bf16.msra.mxu0 %v3417_v18  ;;  %2654 = vmatpush3.bf16.msra.mxu1 %v3420_v21 }
 0x37d   :  { %2655 = vmatprep.subr.bf16.mxu1 %v3089_v0  ;;  %2625 = vmatprep.subr.bf16.mxu0 %v3424_v27 }
 0x380   :  { %2627 = vmatpush1.bf16.msra.mxu0 %v3427_v32  ;;  %2657 = vmatpush3.bf16.msra.mxu1 %v3430_v45 }
 0x381   :  { %2658 = vmatprep.subr.bf16.mxu1 %v3089_v0  ;;  %2629 = vmatprep.subr.bf16.mxu0 %v3434_v38 }
 0x384   :  { %2631 = vmatpush1.bf16.msra.mxu0 %v3437_v43  ;;  %2660 = vmatpush3.bf16.msra.mxu1 %v3440_v49 }
 0x385   :  { %2661 = vmatprep.subr.bf16.mxu1 %v3089_v0  ;;  %2633 = vmatprep.subr.bf16.mxu0 %v3444_v52 }
 0x388   :  { %2635 = vmatpush1.bf16.msra.mxu0 %v3447_v10  ;;  %2663 = vmatpush3.bf16.msra.mxu1 %v3450_v16 }
 0x389   :  { %2664 = vmatprep.subr.bf16.mxu1 %v3089_v0  ;;  %2637 = vmatprep.subr.bf16.mxu0 %v3454_v24 }
 0x38c   :  { %2639 = vmatpush1.bf16.msra.mxu0 %v3457_v36  ;;  %2666 = vmatpush3.bf16.msra.mxu1 %v3460_v44 }
 0x38d   :  { %2641 = vmatprep.subr.bf16.mxu0 %v3463_v57  ;;  %2667 = vmatprep.subr.bf16.mxu1 %v3089_v0 }
 0x390   :  { %2643 = vmatpush1.bf16.msra.mxu0 %v3466_v13  ;;  %2669 = vmatpush3.bf16.msra.mxu1 %v3468_v14 }
 0x391   :  { %2645 = vmatprep.subr.bf16.mxu0 %v3472_v60  ;;  %2670 = vmatprep.subr.bf16.mxu1 %v3089_v0 }
 0x394   :  { %2647 = vmatpush1.bf16.msra.mxu0 %v3475_v6  ;;  %2672 = vmatpush3.bf16.msra.mxu1 %v3479_v15 }
 0x395   :  { %2649 = vmatprep.subr.bf16.mxu0 %v3481_v19  ;;  %2673 = vmatprep.subr.bf16.mxu1 %v3089_v0 }
 0x398   :  { %2651 = vmatpush1.bf16.msra.mxu0 %v3485_v31  ;;  %2675 = vmatpush3.bf16.msra.mxu1 %v3489_v34 }
 0x399   :  { %2677 = vmatprep.subr.bf16.mxu0 %v3415_v9  ;;  %2708 = vmatprep.subr.bf16.mxu1 %v3089_v0 }
 0x44d   :  { %v889_v2 = vpop.f32.mrb[6].mxu0  ;;  %v960_v39 = vpop.f32.mrb[6].mxu1 }
 0x44e   :  { %v964_v40 = vadd.f32 %v889_v2, %v772_v37  ;;  %v891_v48 = vpop.f32.mrb[7].mxu0  ;;  %v2255_v50 = vpop.f32.mrb[7].mxu1  ;;  %v978_v30 = vadd.f32 %v3315_v47, %v960_v39 }
 0x44f   :  { %v971_v54 = vadd.f32 %v891_v48, %v773_v41 }
 0x450   :  { %v1963_v51 = vmul.f32 -1.442695, %v964_v40 }
 0x451   :  { %v1964_v56 = vmul.f32 -1.442695, %v971_v54 }
 0x452   :  { %2890 = vpow2.f32 %v1963_v51  ;;  %v1003_v51 = vld [vmem:[#allocation6 + $0x70] sm:$0xff] }
 0x453   :  { %2892 = vpow2.f32 %v1964_v56 }
 0x45c   :  { %v2891_v58 = vpop.eup %2890 }
 0x45d   :  { %v968_v11 = vadd.f32 1.0, %v2891_v58  ;;  %v2893_v17 = vpop.eup %2892 }
 0x45e   :  { %v975_v22 = vadd.f32 1.0, %v2893_v17 }
 0x45f   :  { %2894 = vrcp.f32 %v968_v11 }
 0x460   :  { %2896 = vrcp.f32 %v975_v22 }
 0x469   :  { %v2895_v33 = vpop.eup %2894 }
 0x46a   :  { %v979_v42 = vmul.f32 %v2895_v33, %v978_v30  ;;  %v2897_v53 = vpop.eup %2896  ;;  %v1221_v33 = vpop.permute.xlu0 %1220 }
 0x46b   :  { %v982_v55 = vsub.f32 1.0, %v2897_v53  ;;  %v984_v7 = vmul.f32 %v2897_v53, %v3408_v62  ;;  %vm1222_vm13 = vcmp.eq.s32.totalorder %v1221_v33, 1  ;;  %v1230_v53 = vld [vmem:[#allocation6 + $0x78] sm:$0xff]  ;;  %v1689_v33 = vld [vmem:[#allocation6 + $0xb0] sm:$0xff] }
 0x46c   :  { %v980_v46 = vadd.f32 %v979_v42, %v774_v35 }
 0x46e   :  { %2898 = vtanh.f32 %v980_v46 }
 0x478   :  { %v2899_v63 = vpop.eup %2898 }
 0x479   :  { %v983_v4 = vmul.f32 %v2899_v63, %v982_v55 }
 0x47b   :  { %v985_v25 = vadd.f32 %v984_v7, %v983_v4  ;;  %v1231_v7 = vld [vmem:[#allocation6 + $0x80] sm:$0xff] }
 0x47d   :  { %v3499_v59 = vsel %vm993_vm12, %v985_v25, %v3408_v62  ;;  %v996_v61 = vsel %vm993_vm12, %v985_v25, 0.0  ;;  %v1001_v62 = vld [vmem:[#allocation6 + $0x60] sm:$0xff] }
 0x47e   :  { %998 = vst [vmem:[#allocation11 + $0x18] sm:$0xff] %v996_v61  ;;  %1117 = vmatmul.mubr.f32.vlgmr.msra.gmra.mrb[8].mxu0 %v3499_v59  ;;  %2289 = vmatmul.mubr.f32.vlgmr.msra.gmra.mrb[8].mxu1 %v3499_v59 }
 0x47f   :  { %2679 = vmatpush1.bf16.msra.mxu0 %v3417_v18  ;;  %2710 = vmatpush3.bf16.msra.mxu1 %v3420_v21 }
 0x480   :  { %2681 = vmatprep.subr.bf16.mxu0 %v3424_v27  ;;  %2711 = vmatprep.subr.bf16.mxu1 %v3089_v0 }
 0x481   :  { %1345 = vmatprep.mubr.f32.mxu0 %v3090_v1  ;;  %2323 = vmatprep.mubr.msk.f32.mxu1 %vm3091_vm0, %v3090_v1 }
 0x483   :  { %2683 = vmatpush1.bf16.msra.mxu0 %v3427_v32  ;;  %2713 = vmatpush3.bf16.msra.mxu1 %v3430_v45 }
 0x484   :  { %2685 = vmatprep.subr.bf16.mxu0 %v3434_v38  ;;  %2714 = vmatprep.subr.bf16.mxu1 %v3089_v0 }
 0x487   :  { %2687 = vmatpush1.bf16.msra.mxu0 %v3437_v43  ;;  %2716 = vmatpush3.bf16.msra.mxu1 %v3440_v49 }
 0x488   :  { %2689 = vmatprep.subr.bf16.mxu0 %v3444_v52  ;;  %2717 = vmatprep.subr.bf16.mxu1 %v3089_v0 }
 0x48b   :  { %2691 = vmatpush1.bf16.msra.mxu0 %v3447_v10  ;;  %2719 = vmatpush3.bf16.msra.mxu1 %v3450_v16 }
 0x48c   :  { %2693 = vmatprep.subr.bf16.mxu0 %v3454_v24  ;;  %2720 = vmatprep.subr.bf16.mxu1 %v3089_v0 }
 0x48f   :  { %2695 = vmatpush1.bf16.msra.mxu0 %v3457_v36  ;;  %2722 = vmatpush3.bf16.msra.mxu1 %v3460_v44 }
 0x490   :  { %2697 = vmatprep.subr.bf16.mxu0 %v3463_v57  ;;  %2723 = vmatprep.subr.bf16.mxu1 %v3089_v0 }
 0x493   :  { %2699 = vmatpush1.bf16.msra.mxu0 %v3466_v13  ;;  %2725 = vmatpush3.bf16.msra.mxu1 %v3468_v14 }
 0x494   :  { %2701 = vmatprep.subr.bf16.mxu0 %v3472_v60  ;;  %2726 = vmatprep.subr.bf16.mxu1 %v3089_v0 }
 0x497   :  { %2703 = vmatpush1.bf16.msra.mxu0 %v3475_v6  ;;  %2728 = vmatpush3.bf16.msra.mxu1 %v3479_v15 }
 0x498   :  { %2705 = vmatprep.subr.bf16.mxu0 %v3481_v19  ;;  %2729 = vmatprep.subr.bf16.mxu1 %v3089_v0 }
 0x49b   :  { %2707 = vmatpush1.bf16.msra.mxu0 %v3485_v31  ;;  %2731 = vmatpush3.bf16.msra.mxu1 %v3489_v34 }
 0x49c   :  { %2733 = vmatprep.subr.bf16.mxu0 %v3415_v9  ;;  %2764 = vmatprep.subr.bf16.mxu1 %v3089_v0 }
 0x551   :  { %v1118_v3 = vpop.f32.mrb[8].mxu0  ;;  %v1189_v5 = vpop.f32.mrb[8].mxu1 }
 0x552   :  { %v1193_v8 = vadd.f32 %v1118_v3, %v1001_v62  ;;  %v1120_v23 = vpop.f32.mrb[9].mxu0  ;;  %v2290_v26 = vpop.f32.mrb[9].mxu1  ;;  %v1207_v48 = vadd.f32 %v3315_v47, %v1189_v5 }
 0x553   :  { %v1200_v29 = vadd.f32 %v1120_v23, %v1002_v12  ;;  %v1232_v26 = vld [vmem:[#allocation6 + $0x88] sm:$0xff] }
 0x554   :  { %v1966_v28 = vmul.f32 -1.442695, %v1193_v8 }
 0x555   :  { %v1967_v37 = vmul.f32 -1.442695, %v1200_v29 }
 0x556   :  { %2900 = vpow2.f32 %v1966_v28 }
 0x557   :  { %2902 = vpow2.f32 %v1967_v37 }
 0x560   :  { %v2901_v2 = vpop.eup %2900 }
 0x561   :  { %v1197_v39 = vadd.f32 1.0, %v2901_v2  ;;  %v2903_v40 = vpop.eup %2902 }
 0x562   :  { %v1204_v41 = vadd.f32 1.0, %v2903_v40 }
 0x563   :  { %2904 = vrcp.f32 %v1197_v39 }
 0x564   :  { %2906 = vrcp.f32 %v1204_v41 }
 0x56d   :  { %v2905_v50 = vpop.eup %2904 }
 0x56e   :  { %v1208_v54 = vmul.f32 %v2905_v50, %v1207_v48  ;;  %v2907_v58 = vpop.eup %2906  ;;  %v1450_v48 = vpop.permute.xlu1 %1449 }
 0x56f   :  { %v1211_v11 = vsub.f32 1.0, %v2907_v58  ;;  %v1213_v30 = vmul.f32 %v2907_v58, %v3499_v59  ;;  %vm1451_vm14 = vcmp.eq.s32.totalorder %v1450_v48, 1 }
 0x570   :  { %v1209_v56 = vadd.f32 %v1208_v54, %v1003_v51 }
 0x572   :  { %2908 = vtanh.f32 %v1209_v56 }
 0x57c   :  { %v2909_v17 = vpop.eup %2908 }
 0x57d   :  { %v1212_v22 = vmul.f32 %v2909_v17, %v1211_v11 }
 0x57f   :  { %v1214_v35 = vadd.f32 %v1213_v30, %v1212_v22 }
 0x581   :  { %v3541_v42 = vsel %vm1222_vm13, %v1214_v35, %v3499_v59  ;;  %v1225_v46 = vsel %vm1222_vm13, %v1214_v35, 0.0 }
 0x582   :  { %1227 = vst [vmem:[#allocation11 + $0x20] sm:$0xff] %v1225_v46  ;;  %1346 = vmatmul.mubr.f32.vlgmr.msra.gmra.mrb[10].mxu0 %v3541_v42  ;;  %2324 = vmatmul.mubr.f32.vlgmr.msra.gmra.mrb[10].mxu1 %v3541_v42 }
 0x583   :  { %2735 = vmatpush1.bf16.msra.mxu0 %v3417_v18  ;;  %2766 = vmatpush3.bf16.msra.mxu1 %v3420_v21 }
 0x584   :  { %2737 = vmatprep.subr.bf16.mxu0 %v3424_v27  ;;  %2767 = vmatprep.subr.bf16.mxu1 %v3089_v0 }
 0x585   :  { %1574 = vmatprep.mubr.f32.mxu0 %v3090_v1  ;;  %2358 = vmatprep.mubr.msk.f32.mxu1 %vm3091_vm0, %v3090_v1 }
 0x587   :  { %2739 = vmatpush1.bf16.msra.mxu0 %v3427_v32  ;;  %2769 = vmatpush3.bf16.msra.mxu1 %v3430_v45 }
 0x588   :  { %2741 = vmatprep.subr.bf16.mxu0 %v3434_v38  ;;  %2770 = vmatprep.subr.bf16.mxu1 %v3089_v0 }
 0x58b   :  { %2743 = vmatpush1.bf16.msra.mxu0 %v3437_v43  ;;  %2772 = vmatpush3.bf16.msra.mxu1 %v3440_v49 }
 0x58c   :  { %2745 = vmatprep.subr.bf16.mxu0 %v3444_v52  ;;  %2773 = vmatprep.subr.bf16.mxu1 %v3089_v0 }
 0x58f   :  { %2747 = vmatpush1.bf16.msra.mxu0 %v3447_v10  ;;  %2775 = vmatpush3.bf16.msra.mxu1 %v3450_v16 }
 0x590   :  { %2749 = vmatprep.subr.bf16.mxu0 %v3454_v24  ;;  %2776 = vmatprep.subr.bf16.mxu1 %v3089_v0 }
 0x593   :  { %2751 = vmatpush1.bf16.msra.mxu0 %v3457_v36  ;;  %2778 = vmatpush3.bf16.msra.mxu1 %v3460_v44 }
 0x594   :  { %2753 = vmatprep.subr.bf16.mxu0 %v3463_v57  ;;  %2779 = vmatprep.subr.bf16.mxu1 %v3089_v0 }
 0x597   :  { %2755 = vmatpush1.bf16.msra.mxu0 %v3466_v13  ;;  %2781 = vmatpush3.bf16.msra.mxu1 %v3468_v14 }
 0x598   :  { %2757 = vmatprep.subr.bf16.mxu0 %v3472_v60  ;;  %2782 = vmatprep.subr.bf16.mxu1 %v3089_v0 }
 0x59b   :  { %2759 = vmatpush1.bf16.msra.mxu0 %v3475_v6  ;;  %2784 = vmatpush3.bf16.msra.mxu1 %v3479_v15 }
 0x59c   :  { %2761 = vmatprep.subr.bf16.mxu0 %v3481_v19  ;;  %2785 = vmatprep.subr.bf16.mxu1 %v3089_v0 }
 0x59f   :  { %2763 = vmatpush1.bf16.msra.mxu0 %v3485_v31  ;;  %2787 = vmatpush3.bf16.msra.mxu1 %v3489_v34 }
 0x5a0   :  { %2789 = vmatprep.subr.bf16.mxu0 %v3415_v9  ;;  %2820 = vmatprep.subr.bf16.mxu1 %v3089_v0 }
 0x655   :  { %v1347_v55 = vpop.f32.mrb[10].mxu0  ;;  %v1418_v63 = vpop.f32.mrb[10].mxu1 }
 0x656   :  { %v1422_v4 = vadd.f32 %v1347_v55, %v1230_v53  ;;  %v1349_v20 = vpop.f32.mrb[11].mxu0  ;;  %v2325_v25 = vpop.f32.mrb[11].mxu1  ;;  %v1436_v9 = vadd.f32 %v3315_v47, %v1418_v63 }
 0x657   :  { %v1429_v61 = vadd.f32 %v1349_v20, %v1231_v7  ;;  %v2940_v25 = vld [vmem:[#allocation9] ss:$0 sm:$0xff] }
 0x658   :  { %v1969_v59 = vmul.f32 -1.442695, %v1422_v4 }
 0x659   :  { %v1970_v62 = vmul.f32 -1.442695, %v1429_v61 }
 0x65a   :  { %2910 = vpow2.f32 %v1969_v59 }
 0x65b   :  { %2912 = vpow2.f32 %v1970_v62  ;;  %v1690_v62 = vld [vmem:[#allocation6 + $0xb8] sm:$0xff] }
 0x664   :  { %v2911_v3 = vpop.eup %2910 }
 0x665   :  { %v1426_v5 = vadd.f32 1.0, %v2911_v3  ;;  %v2913_v8 = vpop.eup %2912 }
 0x666   :  { %v1433_v12 = vadd.f32 1.0, %v2913_v8 }
 0x667   :  { %2914 = vrcp.f32 %v1426_v5 }
 0x668   :  { %2916 = vrcp.f32 %v1433_v12 }
 0x671   :  { %v2915_v23 = vpop.eup %2914 }
 0x672   :  { %v1437_v28 = vmul.f32 %v2915_v23, %v1436_v9  ;;  %v2917_v37 = vpop.eup %2916  ;;  %v1908_v23 = vpop.permute.xlu1 %1907 }
 0x673   :  { %v1440_v2 = vsub.f32 1.0, %v2917_v37  ;;  %v1442_v41 = vmul.f32 %v2917_v37, %v3541_v42 }
 0x674   :  { %v1438_v29 = vadd.f32 %v1437_v28, %v1232_v26 }
 0x676   :  { %2918 = vtanh.f32 %v1438_v29 }
 0x680   :  { %v2919_v39 = vpop.eup %2918 }
 0x681   :  { %v1441_v40 = vmul.f32 %v2919_v39, %v1440_v2 }
 0x683   :  { %v1443_v50 = vadd.f32 %v1442_v41, %v1441_v40 }
 0x685   :  { %v3583_v51 = vsel %vm1451_vm14, %v1443_v50, %v3541_v42  ;;  %v1454_v54 = vsel %vm1451_vm14, %v1443_v50, 0.0 }
 0x686   :  { %1456 = vst [vmem:[#allocation11 + $0x28] sm:$0xff] %v1454_v54  ;;  %1575 = vmatmul.mubr.f32.vlgmr.msra.gmra.mrb[12].mxu0 %v3583_v51  ;;  %2359 = vmatmul.mubr.f32.vlgmr.msra.gmra.mrb[12].mxu1 %v3583_v51 }
 0x687   :  { %2791 = vmatpush1.bf16.msra.mxu0 %v3417_v18  ;;  %2822 = vmatpush3.bf16.msra.mxu1 %v3420_v21 }
 0x688   :  { %2793 = vmatprep.subr.bf16.mxu0 %v3424_v27  ;;  %2823 = vmatprep.subr.bf16.mxu1 %v3089_v0 }
 0x689   :  { %1803 = vmatprep.mubr.f32.mxu0 %v3090_v1  ;;  %2393 = vmatprep.mubr.msk.f32.mxu1 %vm3091_vm0, %v3090_v1  ;;  %v1459_v1 = vld [vmem:[#allocation6 + $0x90] sm:$0xff]  ;;  %vm1909_vm0 = vcmp.eq.s32.totalorder %v1908_v23, 1 }
 0x68b   :  { %2795 = vmatpush1.bf16.msra.mxu0 %v3427_v32  ;;  %2825 = vmatpush3.bf16.msra.mxu1 %v3430_v45  ;;  %v1460_v32 = vld [vmem:[#allocation6 + $0x98] sm:$0xff] }
 0x68c   :  { %2797 = vmatprep.subr.bf16.mxu0 %v3434_v38  ;;  %2826 = vmatprep.subr.bf16.mxu1 %v3089_v0 }
 0x68f   :  { %2799 = vmatpush1.bf16.msra.mxu0 %v3437_v43  ;;  %2828 = vmatpush3.bf16.msra.mxu1 %v3440_v49 }
 0x690   :  { %2801 = vmatprep.subr.bf16.mxu0 %v3444_v52  ;;  %2829 = vmatprep.subr.bf16.mxu1 %v3089_v0 }
 0x693   :  { %2803 = vmatpush1.bf16.msra.mxu0 %v3447_v10  ;;  %2831 = vmatpush3.bf16.msra.mxu1 %v3450_v16 }
 0x694   :  { %2805 = vmatprep.subr.bf16.mxu0 %v3454_v24  ;;  %2832 = vmatprep.subr.bf16.mxu1 %v3089_v0 }
 0x697   :  { %2807 = vmatpush1.bf16.msra.mxu0 %v3457_v36  ;;  %2834 = vmatpush3.bf16.msra.mxu1 %v3460_v44 }
 0x698   :  { %2809 = vmatprep.subr.bf16.mxu0 %v3463_v57  ;;  %2835 = vmatprep.subr.bf16.mxu1 %v3089_v0  ;;  %v1461_v57 = vld [vmem:[#allocation6 + $0xa0] sm:$0xff] }
 0x69b   :  { %2811 = vmatpush1.bf16.msra.mxu0 %v3466_v13  ;;  %2837 = vmatpush3.bf16.msra.mxu1 %v3468_v14 }
 0x69c   :  { %2813 = vmatprep.subr.bf16.mxu0 %v3472_v60  ;;  %2838 = vmatprep.subr.bf16.mxu1 %v3089_v0 }
 0x69f   :  { %2815 = vmatpush1.bf16.msra.mxu0 %v3475_v6  ;;  %2840 = vmatpush3.bf16.msra.mxu1 %v3479_v15 }
 0x6a0   :  { %2817 = vmatprep.subr.bf16.mxu0 %v3481_v19  ;;  %2841 = vmatprep.subr.bf16.mxu1 %v3089_v0  ;;  %v1679_v19 = vpop.permute.xlu0 %1678 }
 0x6a1   :  { %vm1680_vm15 = vcmp.eq.s32.totalorder %v1679_v19, 1 }
 0x6a3   :  { %2819 = vmatpush1.bf16.msra.mxu0 %v3485_v31  ;;  %2843 = vmatpush3.bf16.msra.mxu1 %v3489_v34 }
 0x759   :  { %v1576_v18 = vpop.f32.mrb[12].mxu0  ;;  %v1647_v21 = vpop.f32.mrb[12].mxu1 }
 0x75a   :  { %v1651_v27 = vadd.f32 %v1576_v18, %v1459_v1  ;;  %v1578_v45 = vpop.f32.mrb[13].mxu0  ;;  %v2360_v38 = vpop.f32.mrb[13].mxu1  ;;  %v1665_v36 = vadd.f32 %v3315_v47, %v1647_v21  ;;  %v1688_v47 = vld [vmem:[#allocation6 + $0xa8] sm:$0xff] }
 0x75b   :  { %v1658_v49 = vadd.f32 %v1578_v45, %v1460_v32 }
 0x75c   :  { %v1972_v43 = vmul.f32 -1.442695, %v1651_v27 }
 0x75d   :  { %v1973_v52 = vmul.f32 -1.442695, %v1658_v49 }
 0x75e   :  { %2920 = vpow2.f32 %v1972_v43 }
 0x75f   :  { %2922 = vpow2.f32 %v1973_v52 }
 0x768   :  { %v2921_v10 = vpop.eup %2920 }
 0x769   :  { %v1655_v16 = vadd.f32 1.0, %v2921_v10  ;;  %v2923_v0 = vpop.eup %2922 }
 0x76a   :  { %v1662_v24 = vadd.f32 1.0, %v2923_v0 }
 0x76b   :  { %2924 = vrcp.f32 %v1655_v16 }
 0x76c   :  { %2926 = vrcp.f32 %v1662_v24 }
 0x775   :  { %v2925_v44 = vpop.eup %2924 }
 0x776   :  { %v1666_v13 = vmul.f32 %v2925_v44, %v1665_v36  ;;  %v2927_v60 = vpop.eup %2926 }
 0x777   :  { %v1669_v6 = vsub.f32 1.0, %v2927_v60  ;;  %v1671_v34 = vmul.f32 %v2927_v60, %v3583_v51 }
 0x778   :  { %v1667_v14 = vadd.f32 %v1666_v13, %v1461_v57 }
 0x77a   :  { %2928 = vtanh.f32 %v1667_v14 }
 0x784   :  { %v2929_v15 = vpop.eup %2928 }
 0x785   :  { %v1670_v31 = vmul.f32 %v2929_v15, %v1669_v6 }
 0x787   :  { %v1672_v56 = vadd.f32 %v1671_v34, %v1670_v31 }
 0x789   :  { %v1681_v58 = vsel %vm1680_vm15, %v1672_v56, %v3583_v51  ;;  %v1683_v11 = vsel %vm1680_vm15, %v1672_v56, 0.0 }
 0x78a   :  { %1685 = vst [vmem:[#allocation11 + $0x30] sm:$0xff] %v1683_v11  ;;  %1804 = vmatmul.mubr.f32.vlgmr.msra.gmra.mrb[14].mxu0 %v1681_v58  ;;  %2394 = vmatmul.mubr.f32.vlgmr.msra.gmra.mrb[14].mxu1 %v1681_v58 }
 0x85d   :  { %v1805_v17 = vpop.f32.mrb[14].mxu0  ;;  %v1876_v22 = vpop.f32.mrb[14].mxu1 }
 0x85e   :  { %v1880_v30 = vadd.f32 %v1805_v17, %v1688_v47  ;;  %v1807_v35 = vpop.f32.mrb[15].mxu0  ;;  %v2395_v42 = vpop.f32.mrb[15].mxu1  ;;  %v1894_v59 = vadd.f32 %v2940_v25, %v1876_v22 }
 0x85f   :  { %v1887_v53 = vadd.f32 %v1807_v35, %v1689_v33 }
 0x860   :  { %v1975_v46 = vmul.f32 -1.442695, %v1880_v30 }
 0x861   :  { %v1976_v55 = vmul.f32 -1.442695, %v1887_v53 }
 0x862   :  { %2930 = vpow2.f32 %v1975_v46 }
 0x863   :  { %2932 = vpow2.f32 %v1976_v55 }
 0x86c   :  { %v2931_v63 = vpop.eup %2930 }
 0x86d   :  { %v1884_v4 = vadd.f32 1.0, %v2931_v63  ;;  %v2933_v7 = vpop.eup %2932 }
 0x86e   :  { %v1891_v20 = vadd.f32 1.0, %v2933_v7 }
 0x86f   :  { %2934 = vrcp.f32 %v1884_v4 }
 0x870   :  { %2936 = vrcp.f32 %v1891_v20 }
 0x879   :  { %v2935_v61 = vpop.eup %2934 }
 0x87a   :  { %v1895_v3 = vmul.f32 %v2935_v61, %v1894_v59  ;;  %v2937_v8 = vpop.eup %2936 }
 0x87b   :  { %v1898_v12 = vsub.f32 1.0, %v2937_v8  ;;  %v1900_v28 = vmul.f32 %v2937_v8, %v1681_v58 }
 0x87c   :  { %v1896_v5 = vadd.f32 %v1895_v3, %v1690_v62 }
 0x87e   :  { %2938 = vtanh.f32 %v1896_v5 }
 0x888   :  { %v2939_v9 = vpop.eup %2938 }
 0x889   :  { %v1899_v26 = vmul.f32 %v2939_v9, %v1898_v12 }
 0x88b   :  { %v1901_v29 = vadd.f32 %v1900_v28, %v1899_v26 }
 0x88d   :  { %v1912_v37 = vsel %vm1909_vm0, %v1901_v29, 0.0  ;;  %v1910_v2 = vsel %vm1909_vm0, %v1901_v29, %v1681_v58 }
 0x88e   :  { %1914 = vst [vmem:[#allocation11 + $0x38] sm:$0xff] %v1912_v37  ;;  %1919 = vst [vmem:[#allocation12] sm:$0xff] %v1910_v2 }
 0x88f   :  { %3040 = shalt.err (!%p3037_p8)
}
 0x890   :  { %s3041_s21 = scalar_lea.hbm %s3658_s4, 1024 }
 0x891   :  { %p3042_p9 = scmp.ne.s32.totalorder %s3658_s4, %s3041_s21  ;;  %p3045_p10 = scmp.lt.u32.totalorder %s3041_s21, %s3658_s4 }
 0x893   :  { %p3047_p11 = pnand %p3045_p10, %p3042_p9 }
 0x895   :  { %3050 = shalt.err (!%p3047_p11)
}
 0x896   :  { %s3095_s26 = smov 128   ;;  %s3096_s27 = smov 8  }
 0x897   :  { %1931 = dma.vmem_to_hbm [thread:$0]  %s1926_s10, 1024, %s3658_s4, [#allocation5], %s3095_s26, %s3095_s26, %s3096_s27  }
 0x898   :  { %s3051_s6 = scalar_lea.vmem %s3623_s1, 128  ;;  %p3056_p13 = scmp.lt.s32.totalorder %s3623_s1, %s3623_s1 }
 0x899   :  { %p3052_p12 = scmp.ne.s32.totalorder %s3623_s1, %s3051_s6  ;;  %p3057_p0 = scmp.lt.s32.totalorder %s3051_s6, %s3051_s6 }
 0x89b   :  { %p3058_p1 = por %p3057_p0, %p3056_p13 }
 0x89d   :  { %p3059_p2 = pnand %p3058_p1, %p3052_p12 }
 0x89f   :  { %3062 = shalt.err (!%p3059_p2)
}
 0x8a0   :  { %s3063_s9 = scalar_lea.hbm %s3659_s5, 128 }
 0x8a1   :  { %p3064_p3 = scmp.ne.s32.totalorder %s3659_s5, %s3063_s9  ;;  %p3067_p4 = scmp.lt.u32.totalorder %s3063_s9, %s3659_s5 }
 0x8a3   :  { %p3069_p5 = pnand %p3067_p4, %p3064_p3 }
 0x8a5   :  { %3072 = shalt.err (!%p3069_p5)
}
 0x8a6   :  { %1941 = dma.vmem_to_hbm [thread:$0]  %s3623_s1, 128, %s3659_s5, [#allocation13]  }
 0x8a7   :  { %3079 = dma.done.wait [#allocation5], 1024  }
 0x8a8   :  { %3080 = vsyncadd [#allocation5], 4294966272 }
 0x8a9   :  { %3081 = dma.done.wait [#allocation13], 128  }
 0x8aa   :  { %3082 = vsyncadd [#allocation13], 4294967168 }
 0x8ab   :  { %1948 = vsyncpa [#allocation4], 1 }
 0x8ac   :  { %1949 = vsyncpa [#allocation7], 1 }
 0x8ad   :  { %1950 = vsyncpa [#allocation10], 1 }
 0x8ae   :  { %1951 = vsyncpa [#allocation5], 1 }
 0x8af   :  { %1952 = vsyncpa [#allocation13], 1 }

</bundles_post_ra>
